<compile_context>
chip_gen: v6e
topology: v6e:2x2x1
jax: 0.10.0
libtpu: 0.0.40
codegen_flags: <defaults>
</compile_context>

<pallas_src>
import functools

import jax
import jax.numpy as jnp
from jax.experimental import pallas as pl
from jax.experimental.pallas import tpu as pltpu


# ----------------------------------------------------------------------------
# Pallas kernel
# ----------------------------------------------------------------------------
def _part_encoder_kernel(pc_ref,
                         w1, b1, w2, b2, w3, b3, w4, b4,
                         out_ref, acc_ref, *, bf16_acts):
    """Grid = (S, B, K).  Axis 0: point-split (parallel; S=2 keeps both v7x TCs
    busy when B == 1).  Axis 1: batch (parallel).  Axis 2: point tiles within
    the split (arbitrary; running max held in VMEM scratch)."""
    k = pl.program_id(2)

    @pl.when(k == 0)
    def _():
        acc_ref[...] = jnp.full(acc_ref.shape, -jnp.inf, acc_ref.dtype)

    mm_dtype = jnp.bfloat16                              # MXU operand dtype
    act_dtype = jnp.bfloat16 if bf16_acts else jnp.float32

    # ---- layer 1 (Cin = 3): VPU broadcast-FMAs; keeps the degenerate K=3
    #      matmul off the MXU entirely. ----
    x = pc_ref[0]                                        # (TN, 3) f32
    w1v = w1[...]                                        # (3, 64) f32
    h = b1[...] + x[:, 0:1] * w1v[0:1, :]
    h = h + x[:, 1:2] * w1v[1:2, :]
    h = h + x[:, 2:3] * w1v[2:3, :]
    h = jnp.maximum(h, 0.0).astype(mm_dtype)             # (TN, 64)

    # ---- layers 2-3: MXU matmuls (bf16 operands, f32 accumulation);
    #      bias + ReLU in bf16 on v6e/v7x, f32 on v4/v5. ----
    for w, b in ((w2, b2), (w3, b3)):
        h = jnp.dot(h, w[...], preferred_element_type=jnp.float32)
        h = jnp.maximum(h.astype(act_dtype) + b[...].astype(act_dtype), 0.0)
        h = h.astype(mm_dtype)                           # (TN, 128)

    # ---- layer 4: MXU matmul; epilogue in f32 (feeds the f32 max accumulator,
    #      not another dot). ----
    h = jnp.dot(h, w4[...], preferred_element_type=jnp.float32) + b4[...]
    h = jnp.maximum(h, 0.0)                              # (TN, F) f32

    # Running max over points: reduce the leading (TN//8) axis with elementwise
    # VPU maxes into the (8, F) accumulator; the cross-sublane 8 -> 1 reduce is
    # deferred to the epilogue.
    tn, f = h.shape
    acc_ref[...] = jnp.maximum(acc_ref[...],
                               h.reshape(tn // 8, 8, f).max(axis=0))

    @pl.when(k == pl.num_programs(2) - 1)
    def _():
        pooled = acc_ref[...].max(axis=0, keepdims=True)  # (1, F)
        out_ref[...] = pooled.reshape(out_ref.shape)


# ----------------------------------------------------------------------------
# Wrapper
# ----------------------------------------------------------------------------
def _vmem_budget_bytes(tile_n, F):
    fw = max(F, 128)
    # (TN, 3) input block is lane-padded to 128 lanes, double-buffered, f32.
    pc_buf = 2 * tile_n * 128 * 4
    # Weights (w1 f32 lane/sublane padded, w2-4 bf16), double-buffered.
    weights = 2 * (8 * 128 * 4 + 2 * (64 * 128 + 128 * 128 + 128 * fw))
    # Four padded (8,128) bias rows, double-buffered, f32.
    biases = 2 * 4 * 8 * 128 * 4
    # f32/bf16 intermediate activations (compiler-managed), generous factor.
    acts = 6 * tile_n * fw * 4
    out_acc = 2 * F * 4 + 8 * F * 4
    return pc_buf + weights + biases + acts + out_acc


def _bf16_vpu_default():
    """bf16 bias/ReLU epilogue only where the VPU has a bf16 path (v6e / v7x)."""
    try:
        kind = jax.devices()[0].device_kind.lower()
        return ("v6" in kind) or ("v7" in kind)
    except Exception:
        return False


def part_encoder_pallas(pc, params, *, tile_n=2048, point_splits=None,
                        bf16_acts=None):
    """pc: [B, N, 3] float32.  Returns [B, feat_len] (mu of the sampler)."""
    B, N, _ = pc.shape
    F = params["w4"].shape[1]

    tile_n = min(tile_n, N)
    assert tile_n % 8 == 0, "point tile must be a multiple of 8 (sublanes)"
    assert N % tile_n == 0, "N must be divisible by the point-tile size"
    # TODO(synk): ragged N would need a padded tail tile masked with -inf
    # before the max.

    n_tiles = N // tile_n
    if point_splits is None:
        # Keep both v7x TensorCores busy when B == 1 by splitting the point axis.
        point_splits = 2 if (B == 1 and n_tiles >= 2 and n_tiles % 2 == 0) else 1
    assert n_tiles % point_splits == 0
    k_per_split = n_tiles // point_splits

    if bf16_acts is None:
        bf16_acts = _bf16_vpu_default()

    # TODO(synk): mark the 8 constant weight/bias specs with
    # pipeline_mode=pl.Buffered(1) once single-buffered pipeline_mode is
    # confirmed stable on this JAX version (minor VMEM/misc-slot win).
    full = lambda arr: pl.BlockSpec(arr.shape, lambda s, b, k: (0, 0))

    grid_spec = pltpu.PrefetchScalarGridSpec(
        num_scalar_prefetch=0,
        grid=(point_splits, B, k_per_split),
        in_specs=[
            pl.BlockSpec((1, tile_n, 3),
                         lambda s, b, k: (b, s * k_per_split + k, 0)),   # pc tile
            full(params["w1"]), full(params["b1"]),
            full(params["w2"]), full(params["b2"]),
            full(params["w3"]), full(params["b3"]),
            full(params["w4"]), full(params["b4"]),
        ],
        out_specs=pl.BlockSpec((1, 1, 1, F), lambda s, b, k: (s, b, 0, 0)),
        scratch_shapes=[pltpu.VMEM((8, F), jnp.float32)],
    )

    layer_macs = 3 * 64 + 64 * 128 + 128 * 128 + 128 * F
    cost = pl.CostEstimate(
        flops=2 * B * N * layer_macs,
        transcendentals=0,
        bytes_accessed=(B * N * 3 * 4
                        + 2 * layer_macs                 # ~bf16 weights
                        + 4 * (64 + 128 + 128 + F)       # f32 biases
                        + point_splits * B * F * 4),     # pooled partial outputs
    )

    # Tight, honest VMEM ask: ~2x real footprint, small floor for compiler
    # scratch, capped well below v7x's 64 MiB physical VMEM.
    vmem_limit = int(min(max(2 * _vmem_budget_bytes(tile_n, F), 4 << 20),
                         48 << 20))

    kernel = functools.partial(_part_encoder_kernel, bf16_acts=bf16_acts)

    pooled = pl.pallas_call(
        kernel,
        out_shape=jax.ShapeDtypeStruct((point_splits, B, 1, F), jnp.float32),
        grid_spec=grid_spec,
        compiler_params=pltpu.CompilerParams(
            dimension_semantics=("parallel", "parallel", "arbitrary"),
            vmem_limit_bytes=vmem_limit),
        cost_estimate=cost,
    )(pc,
      params["w1"], params["b1"], params["w2"], params["b2"],
      params["w3"], params["b3"], params["w4"], params["b4"])

    # Combine the per-split partial maxes (post-ReLU values are >= 0).
    feat = pooled.max(axis=0).reshape(B, F)
    # Sampler (probabilistic=False): mu = Linear(feat_len, feat_len).
    # Hoisted out of the kernel: a (B,F)@(F,F) f32 matmul in XLA.
    return feat @ params["w5"] + params["b5"][0]


# ----------------------------------------------------------------------------
# Deterministic parameter construction (synthetic, no checkpoint)
# ----------------------------------------------------------------------------
def make_params(key, feat_len):
    dims = [(3, 64), (64, 128), (128, 128), (128, feat_len)]
    keys = jax.random.split(key, 2 * len(dims) + 2)
    params = {}
    raw = {}
    ki = 0
    for i, (cin, cout) in enumerate(dims, start=1):
        w = jax.random.normal(keys[ki], (cin, cout), jnp.float32) * 0.1; ki += 1
        b = jax.random.normal(keys[ki], (1, cout), jnp.float32) * 0.1; ki += 1
        # BatchNorm1d defaults (eval): gamma=1, beta=0, mean=0, var=1, eps=1e-5
        gamma = jnp.ones((cout,), jnp.float32)
        beta = jnp.zeros((cout,), jnp.float32)
        mean = jnp.zeros((cout,), jnp.float32)
        var = jnp.ones((cout,), jnp.float32)
        eps = 1e-5
        raw[f"conv{i}"] = (w, b, gamma, beta, mean, var, eps)
        # Fold BN into the 1x1 conv (pointwise linear).
        scale = gamma / jnp.sqrt(var + eps)                      # [cout]
        w_fold = w * scale[None, :]
        # Layer 1 runs on the VPU (f32); layers 2-4 feed the MXU (bf16 weights).
        params[f"w{i}"] = w_fold if i == 1 else w_fold.astype(jnp.bfloat16)
        params[f"b{i}"] = ((b[0] - mean) * scale + beta).reshape(1, cout)
    # sampler.mlp2mu (probabilistic=False path) — stays in f32, applied in XLA.
    w5 = jax.random.normal(keys[ki], (feat_len, feat_len), jnp.float32) * 0.1; ki += 1
    b5 = jax.random.normal(keys[ki], (1, feat_len), jnp.float32) * 0.1
    params["w5"], params["b5"] = w5, b5
    raw["mlp2mu"] = (w5, b5)
    return params, raw


# ----------------------------------------------------------------------------
# Pure-JAX f32 reference (BN applied explicitly, not folded) for validation
# ----------------------------------------------------------------------------
def reference(pc, raw):
    h = pc  # [B, N, 3]
    for i in range(1, 5):
        w, b, gamma, beta, mean, var, eps = raw[f"conv{i}"]
        h = jnp.einsum("bnc,cd->bnd", h, w) + b[0]
        h = (h - mean) / jnp.sqrt(var + eps) * gamma + beta
        h = jax.nn.relu(h)
    h = h.max(axis=1)                                            # max over points
    w5, b5 = raw["mlp2mu"]
    return h @ w5 + b5[0]


# ----------------------------------------------------------------------------
if __name__ == "__main__":
    key = jax.random.PRNGKey(0)
    k_pc1, k_pc2, k_par = jax.random.split(key, 3)

    FEAT_LEN = 128
    params, raw = make_params(k_par, FEAT_LEN)

    # Case 1: B=2, default tile (capped to N), no point split.
    B1, N1 = 2, 256
    pc1 = jax.random.normal(k_pc1, (B1, N1, 3), jnp.float32)
    out1 = jax.block_until_ready(part_encoder_pallas(pc1, params))
    ref1 = reference(pc1, raw)
    assert out1.shape == (B1, FEAT_LEN)
    assert jnp.allclose(out1, ref1, atol=3e-2, rtol=3e-2), "mismatch (case 1)"

    # Case 2: B=1 with multiple point tiles — exercises the parallel point-axis
    # split (2 partial maxes combined in the wrapper; keeps both v7x TCs busy).
    B2, N2 = 1, 512
    pc2 = jax.random.normal(k_pc2, (B2, N2, 3), jnp.float32)
    out2 = jax.block_until_ready(part_encoder_pallas(pc2, params, tile_n=128))
    ref2 = reference(pc2, raw)
    assert out2.shape == (B2, FEAT_LEN)
    assert jnp.allclose(out2, ref2, atol=3e-2, rtol=3e-2), "mismatch (case 2)"

    print("KERNEL_OK")
</pallas_src>

<mosaic_0001>
module attributes {stable_mosaic.version = 11 : i64} {
  func.func @_part_encoder_kernel(%arg0: i32, %arg1: i32, %arg2: i32, %arg3: memref<1x256x3xf32, #tpu.memory_space<vmem>>, %arg4: memref<3x64xf32, #tpu.memory_space<vmem>>, %arg5: memref<1x64xf32, #tpu.memory_space<vmem>>, %arg6: memref<64x128xbf16, #tpu.memory_space<vmem>>, %arg7: memref<1x128xf32, #tpu.memory_space<vmem>>, %arg8: memref<128x128xbf16, #tpu.memory_space<vmem>>, %arg9: memref<1x128xf32, #tpu.memory_space<vmem>>, %arg10: memref<128x128xbf16, #tpu.memory_space<vmem>>, %arg11: memref<1x128xf32, #tpu.memory_space<vmem>>, %arg12: memref<1x1x1x128xf32, #tpu.memory_space<vmem>>, %arg13: memref<8x128xf32, #tpu.memory_space<vmem>>) attributes {dimension_semantics = [#tpu.dimension_semantics<parallel>, #tpu.dimension_semantics<parallel>, #tpu.dimension_semantics<arbitrary>], iteration_bounds = array<i64: 1, 2, 1>, scalar_prefetch = 0 : i64, scratch_operands = 1 : i64, tpu.core_type = #tpu.core_type<tc>, window_params = [{transform_indices = @transform_0, window_bounds = array<i64: 1, 256, 3>}, {pipeline_mode = #tpu.pipeline_mode<synchronous>, transform_indices = @transform_1, window_bounds = array<i64: 3, 64>}, {pipeline_mode = #tpu.pipeline_mode<synchronous>, transform_indices = @transform_2, window_bounds = array<i64: 1, 64>}, {pipeline_mode = #tpu.pipeline_mode<synchronous>, transform_indices = @transform_3, window_bounds = array<i64: 64, 128>}, {pipeline_mode = #tpu.pipeline_mode<synchronous>, transform_indices = @transform_4, window_bounds = array<i64: 1, 128>}, {pipeline_mode = #tpu.pipeline_mode<synchronous>, transform_indices = @transform_5, window_bounds = array<i64: 128, 128>}, {pipeline_mode = #tpu.pipeline_mode<synchronous>, transform_indices = @transform_6, window_bounds = array<i64: 1, 128>}, {pipeline_mode = #tpu.pipeline_mode<synchronous>, transform_indices = @transform_7, window_bounds = array<i64: 128, 128>}, {pipeline_mode = #tpu.pipeline_mode<synchronous>, transform_indices = @transform_8, window_bounds = array<i64: 1, 128>}, {transform_indices = @transform_9, window_bounds = array<i64: 1, 1, 1, 128>}]} {
    %c0_i32 = arith.constant 0 : i32
    %0 = arith.cmpi eq, %arg2, %c0_i32 : i32
    %1 = arith.extui %0 : i1 to i32
    %c0_i32_0 = arith.constant 0 : i32
    %2 = arith.cmpi ne, %1, %c0_i32_0 : i32
    scf.if %2 {
      %cst_32 = arith.constant 0xFF800000 : f32
      %60 = vector.broadcast %cst_32 : f32 to vector<8x128xf32>
      %c0_33 = arith.constant 0 : index
      %c0_34 = arith.constant 0 : index
      %61 = vector.load %arg13[%c0_33, %c0_34] : memref<8x128xf32, #tpu.memory_space<vmem>>, vector<8x128xf32>
      tpu.vector_store %arg13[%c0_33, %c0_34], %60 {strides = array<i32>} : memref<8x128xf32, #tpu.memory_space<vmem>>, vector<8x128xf32>,
    } else {
    }
    %c0 = arith.constant 0 : index
    %c0_1 = arith.constant 0 : index
    %c0_2 = arith.constant 0 : index
    %3 = vector.load %arg3[%c0, %c0_1, %c0_2] : memref<1x256x3xf32, #tpu.memory_space<vmem>>, vector<1x256x3xf32>
    %4 = vector.shape_cast %3 : vector<1x256x3xf32> to vector<256x3xf32>
    %c0_3 = arith.constant 0 : index
    %c0_4 = arith.constant 0 : index
    %5 = vector.load %arg4[%c0_3, %c0_4] : memref<3x64xf32, #tpu.memory_space<vmem>>, vector<3x64xf32>
    %c0_5 = arith.constant 0 : index
    %c0_6 = arith.constant 0 : index
    %6 = vector.load %arg5[%c0_5, %c0_6] : memref<1x64xf32, #tpu.memory_space<vmem>>, vector<1x64xf32>
    %7 = vector.extract_strided_slice %4 {offsets = [0, 0], sizes = [256, 1], strides = [1, 1]} : vector<256x3xf32> to vector<256x1xf32>
    %8 = vector.extract_strided_slice %5 {offsets = [0, 0], sizes = [1, 64], strides = [1, 1]} : vector<3x64xf32> to vector<1x64xf32>
    %9 = vector.broadcast %7 : vector<256x1xf32> to vector<256x64xf32>
    %10 = vector.broadcast %8 : vector<1x64xf32> to vector<256x64xf32>
    %11 = arith.mulf %9, %10 : vector<256x64xf32>
    %12 = vector.broadcast %6 : vector<1x64xf32> to vector<256x64xf32>
    %13 = arith.addf %12, %11 : vector<256x64xf32>
    %14 = vector.extract_strided_slice %4 {offsets = [0, 1], sizes = [256, 1], strides = [1, 1]} : vector<256x3xf32> to vector<256x1xf32>
    %15 = vector.extract_strided_slice %5 {offsets = [1, 0], sizes = [1, 64], strides = [1, 1]} : vector<3x64xf32> to vector<1x64xf32>
    %16 = vector.broadcast %14 : vector<256x1xf32> to vector<256x64xf32>
    %17 = vector.broadcast %15 : vector<1x64xf32> to vector<256x64xf32>
    %18 = arith.mulf %16, %17 : vector<256x64xf32>
    %19 = arith.addf %13, %18 : vector<256x64xf32>
    %20 = vector.extract_strided_slice %4 {offsets = [0, 2], sizes = [256, 1], strides = [1, 1]} : vector<256x3xf32> to vector<256x1xf32>
    %21 = vector.extract_strided_slice %5 {offsets = [2, 0], sizes = [1, 64], strides = [1, 1]} : vector<3x64xf32> to vector<1x64xf32>
    %22 = vector.broadcast %20 : vector<256x1xf32> to vector<256x64xf32>
    %23 = vector.broadcast %21 : vector<1x64xf32> to vector<256x64xf32>
    %24 = arith.mulf %22, %23 : vector<256x64xf32>
    %25 = arith.addf %19, %24 : vector<256x64xf32>
    %cst = arith.constant 0.000000e+00 : f32
    %26 = vector.broadcast %cst : f32 to vector<256x64xf32>
    %27 = arith.maximumf %25, %26 : vector<256x64xf32>
    %28 = arith.truncf %27 : vector<256x64xf32> to vector<256x64xbf16>
    %c0_7 = arith.constant 0 : index
    %c0_8 = arith.constant 0 : index
    %29 = vector.load %arg6[%c0_7, %c0_8] : memref<64x128xbf16, #tpu.memory_space<vmem>>, vector<64x128xbf16>
    %cst_9 = arith.constant dense<0.000000e+00> : vector<256x128xf32>
    %30 = tpu.matmul %28, %29, %cst_9 {dimension_numbers = #tpu.dot_dimension_numbers<[1], [0], [0], [1], [0, 0, 1, 1], [], []>} : vector<256x64xbf16>, vector<64x128xbf16>, vector<256x128xf32> -> vector<256x128xf32>
    %c0_10 = arith.constant 0 : index
    %c0_11 = arith.constant 0 : index
    %31 = vector.load %arg7[%c0_10, %c0_11] : memref<1x128xf32, #tpu.memory_space<vmem>>, vector<1x128xf32>
    %32 = vector.broadcast %31 : vector<1x128xf32> to vector<256x128xf32>
    %33 = arith.addf %30, %32 : vector<256x128xf32>
    %cst_12 = arith.constant 0.000000e+00 : f32
    %34 = vector.broadcast %cst_12 : f32 to vector<256x128xf32>
    %35 = arith.maximumf %33, %34 : vector<256x128xf32>
    %36 = arith.truncf %35 : vector<256x128xf32> to vector<256x128xbf16>
    %c0_13 = arith.constant 0 : index
    %c0_14 = arith.constant 0 : index
    %37 = vector.load %arg8[%c0_13, %c0_14] : memref<128x128xbf16, #tpu.memory_space<vmem>>, vector<128x128xbf16>
    %cst_15 = arith.constant dense<0.000000e+00> : vector<256x128xf32>
    %38 = tpu.matmul %36, %37, %cst_15 {dimension_numbers = #tpu.dot_dimension_numbers<[1], [0], [0], [1], [0, 0, 1, 1], [], []>} : vector<256x128xbf16>, vector<128x128xbf16>, vector<256x128xf32> -> vector<256x128xf32>
    %c0_16 = arith.constant 0 : index
    %c0_17 = arith.constant 0 : index
    %39 = vector.load %arg9[%c0_16, %c0_17] : memref<1x128xf32, #tpu.memory_space<vmem>>, vector<1x128xf32>
    %40 = vector.broadcast %39 : vector<1x128xf32> to vector<256x128xf32>
    %41 = arith.addf %38, %40 : vector<256x128xf32>
    %cst_18 = arith.constant 0.000000e+00 : f32
    %42 = vector.broadcast %cst_18 : f32 to vector<256x128xf32>
    %43 = arith.maximumf %41, %42 : vector<256x128xf32>
    %44 = arith.truncf %43 : vector<256x128xf32> to vector<256x128xbf16>
    %c0_19 = arith.constant 0 : index
    %c0_20 = arith.constant 0 : index
    %45 = vector.load %arg10[%c0_19, %c0_20] : memref<128x128xbf16, #tpu.memory_space<vmem>>, vector<128x128xbf16>
    %cst_21 = arith.constant dense<0.000000e+00> : vector<256x128xf32>
    %46 = tpu.matmul %44, %45, %cst_21 {dimension_numbers = #tpu.dot_dimension_numbers<[1], [0], [0], [1], [0, 0, 1, 1], [], []>} : vector<256x128xbf16>, vector<128x128xbf16>, vector<256x128xf32> -> vector<256x128xf32>
    %c0_22 = arith.constant 0 : index
    %c0_23 = arith.constant 0 : index
    %47 = vector.load %arg11[%c0_22, %c0_23] : memref<1x128xf32, #tpu.memory_space<vmem>>, vector<1x128xf32>
    %48 = vector.broadcast %47 : vector<1x128xf32> to vector<256x128xf32>
    %49 = arith.addf %46, %48 : vector<256x128xf32>
    %cst_24 = arith.constant 0.000000e+00 : f32
    %50 = vector.broadcast %cst_24 : f32 to vector<256x128xf32>
    %51 = arith.maximumf %49, %50 : vector<256x128xf32>
    %c0_25 = arith.constant 0 : index
    %c0_26 = arith.constant 0 : index
    %52 = vector.load %arg13[%c0_25, %c0_26] : memref<8x128xf32, #tpu.memory_space<vmem>>, vector<8x128xf32>
    %53 = vector.shape_cast %51 : vector<256x128xf32> to vector<32x8x128xf32>
    %cst_27 = arith.constant dense<0xFF800000> : vector<8x128xf32>
    %54 = vector.multi_reduction <maximumf>, %53, %cst_27 [0] : vector<32x8x128xf32> to vector<8x128xf32>
    %55 = arith.maximumf %52, %54 : vector<8x128xf32>
    %c0_28 = arith.constant 0 : index
    %c0_29 = arith.constant 0 : index
    %56 = vector.load %arg13[%c0_28, %c0_29] : memref<8x128xf32, #tpu.memory_space<vmem>>, vector<8x128xf32>
    tpu.vector_store %arg13[%c0_28, %c0_29], %55 {strides = array<i32>} : memref<8x128xf32, #tpu.memory_space<vmem>>, vector<8x128xf32>,
    %c0_i32_30 = arith.constant 0 : i32
    %57 = arith.cmpi eq, %arg2, %c0_i32_30 : i32
    %58 = arith.extui %57 : i1 to i32
    %c0_i32_31 = arith.constant 0 : i32
    %59 = arith.cmpi ne, %58, %c0_i32_31 : i32
    scf.if %59 {
      %c0_32 = arith.constant 0 : index
      %c0_33 = arith.constant 0 : index
      %60 = vector.load %arg13[%c0_32, %c0_33] : memref<8x128xf32, #tpu.memory_space<vmem>>, vector<8x128xf32>
      %cst_34 = arith.constant dense<0xFF800000> : vector<128xf32>
      %61 = vector.multi_reduction <maximumf>, %60, %cst_34 [0] : vector<8x128xf32> to vector<128xf32>
      %62 = vector.shape_cast %61 : vector<128xf32> to vector<1x128xf32>
      %63 = vector.shape_cast %62 : vector<1x128xf32> to vector<1x1x1x128xf32>
      %c0_35 = arith.constant 0 : index
      %c0_36 = arith.constant 0 : index
      %c0_37 = arith.constant 0 : index
      %c0_38 = arith.constant 0 : index
      %64 = vector.load %arg12[%c0_35, %c0_36, %c0_37, %c0_38] : memref<1x1x1x128xf32, #tpu.memory_space<vmem>>, vector<1x1x1x128xf32>
      tpu.vector_store %arg12[%c0_35, %c0_36, %c0_37, %c0_38], %63 {strides = array<i32>} : memref<1x1x1x128xf32, #tpu.memory_space<vmem>>, vector<1x1x1x128xf32>,
    } else {
    }
    return
  }
  func.func @transform_0(%arg0: i32, %arg1: i32, %arg2: i32) -> (i32, i32, i32) {
    %c1_i32 = arith.constant 1 : i32
    %0 = arith.muli %arg0, %c1_i32 : i32
    %1 = arith.addi %0, %arg2 : i32
    %c0_i32 = arith.constant 0 : i32
    %c0_i32_0 = arith.constant 0 : i32
    return %arg1, %1, %c0_i32 : i32, i32, i32
  }
  func.func @transform_1(%arg0: i32, %arg1: i32, %arg2: i32) -> (i32, i32) {
    %c0_i32 = arith.constant 0 : i32
    %c0_i32_0 = arith.constant 0 : i32
    %c0_i32_1 = arith.constant 0 : i32
    return %c0_i32, %c0_i32_0 : i32, i32
  }
  func.func @transform_2(%arg0: i32, %arg1: i32, %arg2: i32) -> (i32, i32) {
    %c0_i32 = arith.constant 0 : i32
    %c0_i32_0 = arith.constant 0 : i32
    %c0_i32_1 = arith.constant 0 : i32
    return %c0_i32, %c0_i32_0 : i32, i32
  }
  func.func @transform_3(%arg0: i32, %arg1: i32, %arg2: i32) -> (i32, i32) {
    %c0_i32 = arith.constant 0 : i32
    %c0_i32_0 = arith.constant 0 : i32
    %c0_i32_1 = arith.constant 0 : i32
    return %c0_i32, %c0_i32_0 : i32, i32
  }
  func.func @transform_4(%arg0: i32, %arg1: i32, %arg2: i32) -> (i32, i32) {
    %c0_i32 = arith.constant 0 : i32
    %c0_i32_0 = arith.constant 0 : i32
    %c0_i32_1 = arith.constant 0 : i32
    return %c0_i32, %c0_i32_0 : i32, i32
  }
  func.func @transform_5(%arg0: i32, %arg1: i32, %arg2: i32) -> (i32, i32) {
    %c0_i32 = arith.constant 0 : i32
    %c0_i32_0 = arith.constant 0 : i32
    %c0_i32_1 = arith.constant 0 : i32
    return %c0_i32, %c0_i32_0 : i32, i32
  }
  func.func @transform_6(%arg0: i32, %arg1: i32, %arg2: i32) -> (i32, i32) {
    %c0_i32 = arith.constant 0 : i32
    %c0_i32_0 = arith.constant 0 : i32
    %c0_i32_1 = arith.constant 0 : i32
    return %c0_i32, %c0_i32_0 : i32, i32
  }
  func.func @transform_7(%arg0: i32, %arg1: i32, %arg2: i32) -> (i32, i32) {
    %c0_i32 = arith.constant 0 : i32
    %c0_i32_0 = arith.constant 0 : i32
    %c0_i32_1 = arith.constant 0 : i32
    return %c0_i32, %c0_i32_0 : i32, i32
  }
  func.func @transform_8(%arg0: i32, %arg1: i32, %arg2: i32) -> (i32, i32) {
    %c0_i32 = arith.constant 0 : i32
    %c0_i32_0 = arith.constant 0 : i32
    %c0_i32_1 = arith.constant 0 : i32
    return %c0_i32, %c0_i32_0 : i32, i32
  }
  func.func @transform_9(%arg0: i32, %arg1: i32, %arg2: i32) -> (i32, i32, i32, i32) {
    %c0_i32 = arith.constant 0 : i32
    %c0_i32_0 = arith.constant 0 : i32
    %c0_i32_1 = arith.constant 0 : i32
    return %arg0, %arg1, %c0_i32, %c0_i32_0 : i32, i32, i32, i32
  }
}

</mosaic_0001>

<bundles_post_ra>
// kernel: tpu_custom_call.1
= control target key start
LH: loop header
LB: loop body
LE: loop exit
PB: predicated region body
PF: predicated region fallthrough
CT: control target
= control target key end

     0   :  { %s3221_s0 = inlined_call_operand.vmem [shape: f32[2,256,3], index: 0, kind: input, shape index: {}]   ;;  %s3222_s1 = inlined_call_operand.vmem [shape: f32[3,64], index: 1, kind: input, shape index: {}]   ;;  %s3223_s2 = inlined_call_operand.vmem [shape: f32[1,64], index: 2, kind: input, shape index: {}]   ;;  %s3224_s3 = inlined_call_operand.vmem [shape: bf16[64,128], index: 3, kind: input, shape index: {}]   ;;  %s3225_s4 = inlined_call_operand.vmem [shape: f32[1,128], index: 4, kind: input, shape index: {}]   ;;  %s3226_s5 = inlined_call_operand.vmem [shape: bf16[128,128], index: 5, kind: input, shape index: {}]   ;;  %s3227_s6 = inlined_call_operand.vmem [shape: f32[1,128], index: 6, kind: input, shape index: {}]   ;;  %s3228_s7 = inlined_call_operand.vmem [shape: bf16[128,128], index: 7, kind: input, shape index: {}]   ;;  %s3229_s8 = inlined_call_operand.vmem [shape: f32[1,128], index: 8, kind: input, shape index: {}]   ;;  %s3230_s9 = inlined_call_operand.hbm [shape: f32[1,2,1,128], index: 9, kind: output, shape index: {}]  }
   0x1   :  { %3231 = sst [smem:[#allocation6_spill]] %s3221_s0 }
   0x2   :  { %14 = vsyncpa [#allocation4], 0 }
   0x3   :  { %16 = vsyncpa [#allocation4 + $0x1], 0  ;;  %s2565_s30 = smov 0   ;;  %s2567_s10 = smov 0  }
   0x4   :  { %s2569_s11 = smov 0   ;;  %s2571_s12 = smov 0  }
   0x5   :  { %s2573_s13 = smov 0   ;;  %s2575_s14 = smov 0  }
   0x6 LB: > { %s2063_s15 = sadd.s32 4294967295, %s2509_s14   ;;  %s2064_s16 = sadd.s32 4294967294, %s2509_s14   ;;  %s2509_s14 = sphi %s2575_s14, %s22_s14   ;;  %s2505_s13 = sphi %s2573_s13, %s3239_s13   ;;  %s2501_s12 = sphi %s2571_s12, %s3238_s12   ;;  %s2497_s11 = sphi %s2569_s11, %s3237_s11   ;;  %s2493_s10 = sphi %s2567_s10, %s3236_s10   ;;  %s2489_s30 = sphi %s2565_s30, %s3235_s30  }
   0x7   : > { %s37_s17 = sadd.s32 1, %s2505_s13  ;;  %s248_s18 = sadd.s32 1, %s2497_s11 }
   0x8   : > { %p39_p0 = scmp.ge.s32.totalorder %s37_s17, 2  ;;  %p258_p1 = scmp.ne.s32.totalorder %s2497_s11, %s2493_s10 }
   0x9   : > { %p259_p2 = scmp.eq.s32.totalorder %s2063_s15, 1  ;;  %p264_p3 = scmp.ne.s32.totalorder %s2493_s10, %s2489_s30 }
   0xa   : > { %s3241_s17 = smov (%p39_p0, %s37_s17), 0  ;;  %p265_p5 = scmp.eq.s32.totalorder %s2064_s16, 1 }
   0xb   : > { %p2605_p4 = por %p259_p2, %p258_p1  ;;  %s244_s20 = ssub.s32 %s2505_s13, %s3241_s17 }
   0xc   : > { %p2067_p6 = scmp.ge.s32.totalorder %s2509_s14, 1  ;;  %p246_p7 = scmp.eq.s32.totalorder %s244_s20, 0 }
   0xd   : > { %p2612_p8 = por %p265_p5, %p264_p3  ;;  %p322_p9 = scmp.lt.s32.totalorder %s2509_s14, 3 }
   0xe   : > { %s2618_s22 = scalar_select %p246_p7, %s2497_s11, %s248_s18  }
   0xf   : > { %p323_p10 = pnand %p2067_p6, %p322_p9 }
  0x10   : > { %p364_p11 = scmp.lt.s32.totalorder (!%p323_p10), %s2501_s12, 1  ;;  %s3234_s0 = sld [smem:[#allocation6_spill]] (!%p323_p10) }
  0x11   : > { %326 = sbr.rel (%p323_p10) target bundleno = 1060 (0x424), region = 56  ;;  %s2514_s18 = smov (!%p323_p10), [#allocation3]  }
  0x12   : > { %s2437_s20 = sshll.u32 (!%p323_p10), %s2514_s18, 4  ;;  %s2438_s20 = int_to_ptr.vmem [resolvable:$false] %s2437_s20 }
  0x16   : > { %v2511_v0 = vmov 1   ;;  %v2512_v1 = vmov 0   ;;  %s365_s23 = scalar_select %p364_p11, %s2501_s12, 1  ;;  %v2513_v9 = vmov 2   ;;  %v2413_v20 = vld [vmem:[%s3224_s3 + $0x18] sm:$0xff]   ;;  %v2414_v21 = vld [vmem:[%s3224_s3 + $0x10] sm:$0xff]   ;;  %v574_v60 = vlaneseq }
  0x17   : > { %2385 = vset.pattern.permute.xlu0 %v2511_v0  ;;  %2384 = vset.pattern.permute.xlu1 %v2512_v1  ;;  %v2415_v23 = vld [vmem:[%s3224_s3 + $0x8] sm:$0xff]   ;;  %v2416_v24 = vld [vmem:[%s3224_s3] sm:$0xff]   ;;  %vm1127_vm0 = vcmask 523264  }
  0x18   : > { %s2113_s24 = sshll.u32 %s365_s23, 8  ;;  %2182 = vmatprep.subr.bf16.mxu0 %v2413_v20  ;;  %2318 = vmatprep.subr.bf16.mxu1 %v2413_v20  ;;  %v575_v63 = vshrl.u32 %v574_v60, 7  ;;  %s360_s23 = sand.u32 1, %s2493_s10  }
  0x19   : > { %s2627_s27 = scalar_lea.vmem %s3234_s0, %s2113_s24  ;;  %2183 = vmatpush3.bf16.msra.mxu0 %v2413_v20  ;;  %2322 = vmatpush3.bf16.msra.mxu1 %v2413_v20  ;;  %s2110_s24 = sshll.u32 %s2501_s12, 4 }
  0x1a   : > { %v382_v2 = vld [vmem:[%s2627_s27 + $0x10] sm:$0xff]  ;;  %v380_v3 = vld [vmem:[%s2627_s27] sm:$0xff]  ;;  %v383_v4 = vld [vmem:[%s2627_s27 + $0x18] sm:$0xff]  ;;  %2184 = vmatprep.subr.bf16.mxu0 %v2414_v21  ;;  %2319 = vmatprep.subr.bf16.mxu1 %v2414_v21  ;;  %s361_s25 = scalar_lea.vmem [#allocation3], %s360_s23  ;;  %s1975_s15 = scalar_lea.sflag [#allocation4], %s360_s23 }
  0x1b   : > { %426 = vperm.xlu1 %2384, %v382_v2   ;;  %649 = vperm.xlu0 %2385, %v380_v3   ;;  %v385_v5 = vld [vmem:[%s2627_s27 + $0x28] sm:$0xff]  ;;  %v2635_v7 = vld [vmem:[%s2627_s27 + $0x40] sm:$0xff]  ;;  %v2639_v8 = vld [vmem:[%s2627_s27 + $0x58] sm:$0xff]  ;;  %s1989_s26 = sshll.u32 %s361_s25, 4  ;;  %s2439_s12 = scalar_lea.vmem %s2438_s20, 32  ;;  %s1990_s26 = int_to_ptr.vmem [resolvable:$true] %s1989_s26 }
  0x1c   : > { %v381_v6 = vld [vmem:[%s2627_s27 + $0x8] sm:$0xff]  ;;  %v384_v10 = vld [vmem:[%s2627_s27 + $0x20] sm:$0xff]  ;;  %v387_v11 = vld [vmem:[%s2627_s27 + $0x38] sm:$0xff]  ;;  %s2433_s16 = scalar_lea.vmem %s1990_s26, 16  ;;  %p2440_p1 = scmp.lt.s32.totalorder %s1990_s26, %s2438_s20 }
  0x1d   : > { %v389_v12 = vld [vmem:[%s2627_s27 + $0x48] sm:$0xff]  ;;  %v386_v13 = vld [vmem:[%s2627_s27 + $0x30] sm:$0xff]  ;;  %v2651_v14 = vld [vmem:[%s2627_s27 + $0x60] sm:$0xff]  ;;  %2185 = vmatpush3.bf16.msra.mxu0 %v2414_v21  ;;  %2323 = vmatpush3.bf16.msra.mxu1 %v2414_v21  ;;  %p2434_p12 = scmp.ne.s32.totalorder %s1990_s26, %s2433_s16  ;;  %p2441_p2 = scmp.lt.s32.totalorder %s2439_s12, %s2433_s16 }
  0x1e   : > { %v2655_v15 = vld [vmem:[%s2627_s27 + $0x78] sm:$0xff]  ;;  %v2660_v16 = vld [vmem:[%s2627_s27 + $0x88] sm:$0xff]  ;;  %v2664_v17 = vld [vmem:[%s2627_s27 + $0xa0] sm:$0xff]  ;;  %2186 = vmatprep.subr.bf16.mxu0 %v2415_v23  ;;  %2320 = vmatprep.subr.bf16.mxu1 %v2415_v23 }
  0x1f   : > { %431 = vperm.xlu1 %2384, %v383_v4   ;;  %661 = vperm.xlu0 %2385, %v383_v4   ;;  %v2668_v18 = vld [vmem:[%s2627_s27 + $0xb8] sm:$0xff]  ;;  %v2673_v19 = vld [vmem:[%s2627_s27 + $0xc8] sm:$0xff]  ;;  %v390_v22 = vld [vmem:[%s2627_s27 + $0x50] sm:$0xff]  ;;  %p2435_p13 = pnand %p2434_p12, %p2605_p4  ;;  %p2442_p3 = por %p2441_p2, %p2440_p1 }
  0x20   : > { %v393_v25 = vld [vmem:[%s2627_s27 + $0x68] sm:$0xff]  ;;  %v394_v26 = vld [vmem:[%s2627_s27 + $0x70] sm:$0xff]  ;;  %v2707_v27 = vld [vmem:[%s2627_s27 + $0xe0] sm:$0xff] }
  0x21   : > { %2187 = vmatpush3.bf16.msra.mxu0 %v2415_v23  ;;  %2324 = vmatpush3.bf16.msra.mxu1 %v2415_v23  ;;  %v2713_v28 = vld [vmem:[%s2627_s27 + $0xf8] sm:$0xff]  ;;  %v396_v29 = vld [vmem:[%s2627_s27 + $0x80] sm:$0xff]  ;;  %v2726_v33 = vld [vmem:[%s2627_s27 + $0xa8] sm:$0xff]  ;;  %p2436_p0 = pneg %p2435_p13 }
  0x22   : > { %2188 = vmatprep.subr.bf16.mxu0 %v2416_v24  ;;  %2321 = vmatprep.subr.bf16.mxu1 %v2416_v24  ;;  %v399_v30 = vld [vmem:[%s2627_s27 + $0x98] sm:$0xff]  ;;  %v398_v36 = vld [vmem:[%s2627_s27 + $0x90] sm:$0xff]  ;;  %v2736_v37 = vld [vmem:[%s2627_s27 + $0xc0] sm:$0xff] }
  0x23   : > { %2386 = vset.pattern.permute.xlu1 %v2511_v0  ;;  %669 = vperm.xlu0 %2385, %v385_v5   ;;  %v2744_v40 = vld [vmem:[%s2627_s27 + $0xd8] sm:$0xff]  ;;  %v2752_v43 = vld [vmem:[%s2627_s27 + $0xe8] sm:$0xff]  ;;  %v402_v57 = vld [vmem:[%s2627_s27 + $0xb0] sm:$0xff]  ;;  %p2443_p5 = pnand %p2442_p3, %p2436_p0 }
  0x24   : > { %653 = vperm.xlu1 %2386, %v381_v6  }
  0x25   : > { %2189 = vmatpush3.bf16.msra.mxu0 %v2416_v24  ;;  %2325 = vmatpush3.bf16.msra.mxu1 %v2416_v24 }
  0x27   : > { %681 = vperm.xlu0 %2385, %v2635_v7  }
  0x28   : > { %657 = vperm.xlu1 %2386, %v382_v2  }
  0x2b   : > { %693 = vperm.xlu0 %2385, %v2639_v8  }
  0x2c   : > { %2387 = vset.pattern.permute.xlu1 %v2513_v9 }
  0x2d   : > { %845 = vperm.xlu1 %2387, %v380_v3  }
  0x2f   : > { %2393 = vset.pattern.permute.xlu0 %v2513_v9 }
  0x30   : > { %849 = vperm.xlu0 %2393, %v381_v6  }
  0x31   : > { %853 = vperm.xlu1 %2387, %v382_v2  }
  0x34   : > { %861 = vperm.xlu0 %2393, %v384_v10  }
  0x35   : > { %857 = vperm.xlu1 %2387, %v383_v4   ;;  %v576_v4 = vsub.s32 0, %v575_v63 }
  0x38   : > { %873 = vperm.xlu0 %2393, %v387_v11  }
  0x39   : > { %2388 = vset.pattern.permute.xlu1 %v2512_v1 }
  0x3a   : > { %441 = vperm.xlu1 %2388, %v385_v5  }
  0x3c   : > { %881 = vperm.xlu0 %2393, %v389_v12  }
  0x3e   : > { %446 = vperm.xlu1 %2388, %v386_v13  }
  0x40   : > { %893 = vperm.xlu0 %2393, %v2651_v14  }
  0x42   : > { %2389 = vset.pattern.permute.xlu1 %v2511_v0 }
  0x43   : > { %665 = vperm.xlu1 %2389, %v384_v10  }
  0x44   : > { %905 = vperm.xlu0 %2393, %v2655_v15  }
  0x47   : > { %673 = vperm.xlu1 %2389, %v386_v13  }
  0x48   : > { %913 = vperm.xlu0 %2393, %v2660_v16  }
  0x4b   : > { %677 = vperm.xlu1 %2389, %v387_v11  }
  0x4c   : > { %925 = vperm.xlu0 %2393, %v2664_v17  }
  0x4f   : > { %2390 = vset.pattern.permute.xlu1 %v2513_v9 }
  0x50   : > { %865 = vperm.xlu1 %2390, %v385_v5   ;;  %937 = vperm.xlu0 %2393, %v2668_v18   ;;  %v412_v5 = vld [vmem:[%s3222_s1] sm:$0x7] }
  0x54   : > { %869 = vperm.xlu1 %2390, %v386_v13   ;;  %945 = vperm.xlu0 %2393, %v2673_v19   ;;  %v974_v13 = vsub.s32 2, %v575_v63 }
  0x56   : > { %v2821_v23 = vrot.slane %v412_v5, %v974_v13 }
  0x58   : > { %2391 = vset.pattern.permute.xlu1 %v2512_v1  ;;  %2407 = vset.pattern.permute.xlu0 %v2512_v1 }
  0x59   : > { %456 = vperm.xlu1 %2391, %v2635_v7   ;;  %416 = vperm.xlu0 %2407, %v380_v3  }
  0x5d   : > { %466 = vperm.xlu1 %2391, %v390_v22   ;;  %421 = vperm.xlu0 %2407, %v381_v6   ;;  %v778_v6 = vsub.s32 1, %v575_v63 }
  0x61   : > { %471 = vperm.xlu1 %2391, %v2639_v8   ;;  %436 = vperm.xlu0 %2407, %v384_v10   ;;  %v2800_v10 = vrot.slane %v412_v5, %v576_v4 }
  0x65   : > { %2392 = vset.pattern.permute.xlu1 %v2511_v0  ;;  %451 = vperm.xlu0 %2407, %v387_v11   ;;  %v2802_v11 = vrot.slane %v412_v5, %v778_v6 }
  0x66   : > { %685 = vperm.xlu1 %2392, %v389_v12  }
  0x69   : > { %461 = vperm.xlu0 %2407, %v389_v12  }
  0x6a   : > { %689 = vperm.xlu1 %2392, %v390_v22  }
  0x6d   : > { %476 = vperm.xlu0 %2407, %v2651_v14  }
  0x6e   : > { %2394 = vset.pattern.permute.xlu1 %v2513_v9 }
  0x6f   : > { %877 = vperm.xlu1 %2394, %v2635_v7  }
  0x71   : > { %491 = vperm.xlu0 %2407, %v2655_v15  }
  0x73   : > { %885 = vperm.xlu1 %2394, %v390_v22  }
  0x75   : > { %501 = vperm.xlu0 %2407, %v2660_v16  }
  0x77   : > { %889 = vperm.xlu1 %2394, %v2639_v8  }
  0x79   : > { %516 = vperm.xlu0 %2407, %v2664_v17  }
  0x7b   : > { %2395 = vset.pattern.permute.xlu1 %v2512_v1 }
  0x7c   : > { %481 = vperm.xlu1 %2395, %v393_v25  }
  0x7d   : > { %531 = vperm.xlu0 %2407, %v2668_v18  }
  0x80   : > { %486 = vperm.xlu1 %2395, %v394_v26  }
  0x81   : > { %541 = vperm.xlu0 %2407, %v2673_v19  }
  0x84   : > { %2396 = vset.pattern.permute.xlu1 %v2511_v0 }
  0x85   : > { %697 = vperm.xlu1 %2396, %v2651_v14   ;;  %556 = vperm.xlu0 %2407, %v2707_v27  }
  0x89   : > { %705 = vperm.xlu1 %2396, %v394_v26   ;;  %571 = vperm.xlu0 %2407, %v2713_v28  }
  0x8d   : > { %709 = vperm.xlu1 %2396, %v2655_v15   ;;  %2409 = vset.pattern.permute.xlu0 %v2511_v0 }
  0x8e   : > { %701 = vperm.xlu0 %2409, %v393_v25  }
  0x91   : > { %2397 = vset.pattern.permute.xlu1 %v2513_v9 }
  0x92   : > { %897 = vperm.xlu1 %2397, %v393_v25   ;;  %713 = vperm.xlu0 %2409, %v396_v29  }
  0x96   : > { %v2721_v31 = vpop.permute.xlu1 %426  ;;  %901 = vperm.xlu1 %2397, %v394_v26   ;;  %v2723_v32 = vpop.permute.xlu0 %649  ;;  %725 = vperm.xlu0 %2409, %v399_v30  }
  0x9a   : > { %v2728_v34 = vpop.permute.xlu1 %431  ;;  %2398 = vset.pattern.permute.xlu1 %v2512_v1  ;;  %v2731_v35 = vpop.permute.xlu0 %661  ;;  %733 = vperm.xlu0 %2409, %v2726_v33  }
  0x9b   : > { %496 = vperm.xlu1 %2398, %v396_v29   ;;  %v581_v12 = vmul.f32 %v2800_v10, %v2728_v34  ;;  %v783_v22 = vmul.f32 %v2802_v11, %v2731_v35 }
  0x9e   : > { %v2738_v38 = vpop.permute.xlu0 %669  ;;  %745 = vperm.xlu0 %2409, %v2736_v37  }
  0x9f   : > { %v2741_v39 = vpop.permute.xlu1 %653  ;;  %506 = vperm.xlu1 %2398, %v398_v36  }
  0xa2   : > { %v2746_v41 = vpop.permute.xlu0 %681  ;;  %757 = vperm.xlu0 %2409, %v2744_v40  }
  0xa3   : > { %v2749_v42 = vpop.permute.xlu1 %657  ;;  %511 = vperm.xlu1 %2398, %v399_v30  }
  0xa4   : > { %v782_v26 = vmul.f32 %v2802_v11, %v2749_v42 }
  0xa6   : > { %v2754_v44 = vpop.permute.xlu0 %693  ;;  %765 = vperm.xlu0 %2409, %v2752_v43  }
  0xa7   : > { %2399 = vset.pattern.permute.xlu1 %v2511_v0 }
  0xa8   : > { %717 = vperm.xlu1 %2399, %v2660_v16   ;;  %v2759_v45 = vpop.permute.xlu1 %845  ;;  %v2811_v16 = vld [vmem:[%s3223_s2] ss:$0 sm:$0xff] }
  0xa9   : > { %v619_v21 = vadd.f32 %v2811_v16, %v581_v12 }
  0xaa   : > { %2411 = vset.pattern.permute.xlu0 %v2513_v9 }
  0xab   : > { %v2762_v46 = vpop.permute.xlu0 %849  ;;  %957 = vperm.xlu0 %2411, %v2707_v27   ;;  %v815_v35 = vadd.f32 %v783_v22, %v619_v21 }
  0xac   : > { %721 = vperm.xlu1 %2399, %v398_v36   ;;  %v2765_v47 = vpop.permute.xlu1 %853  ;;  %v977_v60 = vmul.f32 %v2821_v23, %v2762_v46 }
  0xaf   : > { %v2767_v48 = vpop.permute.xlu0 %861  ;;  %969 = vperm.xlu0 %2411, %v2713_v28  }
  0xb0   : > { %2400 = vset.pattern.permute.xlu1 %v2513_v9  ;;  %v858_v49 = vpop.permute.xlu1 %857 }
  0xb1   : > { %909 = vperm.xlu1 %2400, %v396_v29   ;;  %v979_v29 = vmul.f32 %v2821_v23, %v858_v49  ;;  %v781_v49 = vmul.f32 %v2802_v11, %v2741_v39 }
  0xb3   : > { %v2771_v50 = vpop.permute.xlu0 %873  ;;  %v1011_v5 = vadd.f32 %v979_v29, %v815_v35 }
  0xb5   : > { %917 = vperm.xlu1 %2400, %v398_v36   ;;  %v442_v51 = vpop.permute.xlu1 %441  ;;  %v785_v36 = vmul.f32 %v2802_v11, %v2738_v38  ;;  %v1043_v22 = vmax.f32 %v1011_v5, 0.0 }
  0xb6   : > { %v583_v24 = vmul.f32 %v2800_v10, %v442_v51  ;;  %v978_v51 = vmul.f32 %v2821_v23, %v2765_v47 }
  0xb7   : > { %v2773_v52 = vpop.permute.xlu0 %881 }
  0xb8   : > { %v621_v42 = vadd.f32 %v2811_v16, %v583_v24 }
  0xb9   : > { %921 = vperm.xlu1 %2400, %v399_v30   ;;  %v447_v53 = vpop.permute.xlu1 %446 }
  0xba   : > { %v584_v38 = vmul.f32 %v2800_v10, %v447_v53  ;;  %v980_v53 = vmul.f32 %v2821_v23, %v2767_v48 }
  0xbb   : > { %v2775_v54 = vpop.permute.xlu0 %893 }
  0xbc   : > { %v622_v24 = vadd.f32 %v2811_v16, %v584_v38 }
  0xbd   : > { %2401 = vset.pattern.permute.xlu1 %v2512_v1 }
  0xbe   : > { %521 = vperm.xlu1 %2401, %v2726_v33   ;;  %v2779_v55 = vpop.permute.xlu1 %665 }
  0xbf   : > { %v2781_v56 = vpop.permute.xlu0 %905 }
  0xc2   : > { %526 = vperm.xlu1 %2401, %v402_v57   ;;  %v674_v58 = vpop.permute.xlu1 %673 }
  0xc3   : > { %v2784_v59 = vpop.permute.xlu0 %913 }
  0xc6   : > { %2402 = vset.pattern.permute.xlu1 %v2511_v0  ;;  %v2787_v61 = vpop.permute.xlu1 %677 }
  0xc7   : > { %729 = vperm.xlu1 %2402, %v2664_v17   ;;  %v2790_v62 = vpop.permute.xlu0 %925  ;;  %v580_v17 = vmul.f32 %v2800_v10, %v2721_v31 }
  0xcb   : > { %737 = vperm.xlu1 %2402, %v402_v57   ;;  %v866_v2 = vpop.permute.xlu1 %865  ;;  %v2792_v3 = vpop.permute.xlu0 %937 }
  0xcc   : > { %v981_v47 = vmul.f32 %v2821_v23, %v866_v2  ;;  %v784_v2 = vmul.f32 %v2802_v11, %v2779_v55  ;;  %v983_v55 = vmul.f32 %v2821_v23, %v2771_v50 }
  0xcf   : > { %741 = vperm.xlu1 %2402, %v2668_v18   ;;  %v870_v7 = vpop.permute.xlu1 %869  ;;  %v2798_v8 = vpop.permute.xlu0 %945  ;;  %v780_v18 = vmul.f32 %v2802_v11, %v2723_v32  ;;  %v618_v32 = vadd.f32 %v2811_v16, %v580_v17  ;;  %v817_v17 = vadd.f32 %v785_v36, %v621_v42 }
  0xd1   : > { %v814_v4 = vadd.f32 %v782_v26, %v618_v32  ;;  %v982_v26 = vmul.f32 %v2821_v23, %v870_v7 }
  0xd3   : > { %2403 = vset.pattern.permute.xlu1 %v2513_v9  ;;  %v1010_v46 = vadd.f32 %v978_v51, %v814_v4  ;;  %v787_v51 = vmul.f32 %v2802_v11, %v2787_v61  ;;  %v788_v61 = vmul.f32 %v2802_v11, %v2746_v41 }
  0xd4   : > { %929 = vperm.xlu1 %2403, %v2726_v33   ;;  %v457_v14 = vpop.permute.xlu1 %456  ;;  %v417_v15 = vpop.permute.xlu0 %416 }
  0xd5   : > { %v578_v20 = vmul.f32 %v2800_v10, %v417_v15  ;;  %v786_v15 = vmul.f32 %v2802_v11, %v674_v58  ;;  %v586_v36 = vmul.f32 %v2800_v10, %v457_v14  ;;  %v985_v14 = vmul.f32 %v2821_v23, %v2773_v52 }
  0xd7   : > { %v616_v25 = vadd.f32 %v2811_v16, %v578_v20  ;;  %v818_v35 = vadd.f32 %v786_v15, %v622_v24 }
  0xd8   : > { %933 = vperm.xlu1 %2403, %v402_v57   ;;  %v2828_v30 = vpop.permute.xlu1 %466  ;;  %v422_v31 = vpop.permute.xlu0 %421  ;;  %v976_v57 = vmul.f32 %v2821_v23, %v2759_v45 }
  0xd9   : > { %v812_v33 = vadd.f32 %v780_v18, %v616_v25  ;;  %v579_v34 = vmul.f32 %v2800_v10, %v422_v31  ;;  %v2851_v18 = vld [vmem:[%s2627_s27 + $0xd0] sm:$0xff]  ;;  %v1013_v25 = vadd.f32 %v981_v47, %v817_v17  ;;  %v1014_v4 = vadd.f32 %v982_v26, %v818_v35 }
  0xda   : > { %v588_v41 = vmul.f32 %v2800_v10, %v2828_v30 }
  0xdb   : > { %v617_v63 = vadd.f32 %v2811_v16, %v579_v34  ;;  %v1008_v45 = vadd.f32 %v976_v57, %v812_v33  ;;  %v1042_v34 = vmax.f32 %v1010_v46, 0.0  ;;  %v1046_v17 = vmax.f32 %v1014_v4, 0.0 }
  0xdc   : > { %2404 = vset.pattern.permute.xlu1 %v2512_v1  ;;  %v472_v6 = vpop.permute.xlu1 %471  ;;  %v437_v12 = vpop.permute.xlu0 %436 }
  0xdd   : > { %v813_v39 = vadd.f32 %v781_v49, %v617_v63  ;;  %v582_v13 = vmul.f32 %v2800_v10, %v437_v12  ;;  %536 = vperm.xlu1 %2404, %v2736_v37   ;;  %v1040_v48 = vmax.f32 %v1008_v45, 0.0  ;;  %v1073_v57 = vpack.c.bf16 %v1043_v22, %v1042_v34 }
  0xde   : > { %v624_v12 = vadd.f32 %v2811_v16, %v586_v36 }
  0xdf   : > { %v620_v20 = vadd.f32 %v2811_v16, %v582_v13  ;;  %v1009_v21 = vadd.f32 %v977_v60, %v813_v39  ;;  %v1045_v60 = vmax.f32 %v1013_v25, 0.0 }
  0xe0   : > { %v452_v58 = vpop.permute.xlu0 %451 }
  0xe1   : > { %v816_v29 = vadd.f32 %v784_v2, %v620_v20  ;;  %v585_v31 = vmul.f32 %v2800_v10, %v452_v58  ;;  %546 = vperm.xlu1 %2404, %v2851_v18   ;;  %v686_v32 = vpop.permute.xlu1 %685  ;;  %v1041_v33 = vmax.f32 %v1009_v21, 0.0  ;;  %v820_v20 = vadd.f32 %v788_v61, %v624_v12  ;;  %v410_v61 = vld [vmem:[%s2627_s27 + $0xf0] sm:$0xff]  ;;  %s1987_s27 = scalar_lea.hbm %s3230_s9, %s2110_s24 }
  0xe2   : > { %v789_v13 = vmul.f32 %v2802_v11, %v686_v32  ;;  %v589_v21 = vmul.f32 %v2800_v10, %v472_v6  ;;  %v626_v32 = vadd.f32 %v2811_v16, %v588_v41 }
  0xe3   : > { %v1012_v7 = vadd.f32 %v980_v53, %v816_v29  ;;  %v623_v42 = vadd.f32 %v2811_v16, %v585_v31  ;;  %v1072_v49 = vpack.c.bf16 %v1041_v33, %v1040_v48  ;;  %v791_v31 = vmul.f32 %v2802_v11, %v2754_v44 }
  0xe4   : > { %v462_v63 = vpop.permute.xlu0 %461  ;;  %v627_v30 = vadd.f32 %v2811_v16, %v589_v21 }
  0xe5   : > { %v1044_v5 = vmax.f32 %v1012_v7, 0.0  ;;  %v819_v38 = vadd.f32 %v787_v51, %v623_v42  ;;  %v587_v47 = vmul.f32 %v2800_v10, %v462_v63  ;;  %551 = vperm.xlu1 %2404, %v2744_v40   ;;  %v690_v50 = vpop.permute.xlu1 %689  ;;  %2190 = vmatprep.mubr.msk.bf16.mxu0 %vm1127_vm0, %v1072_v49 }
  0xe6   : > { %2191 = vmatmul.mubr.msk.bf16.vlgmr.msra.gmra.mxu0 %vm1127_vm0, %v1073_v57  ;;  %v790_v58 = vmul.f32 %v2802_v11, %v690_v50  ;;  %v823_v51 = vadd.f32 %v791_v31, %v627_v30 }
  0xe7   : > { %v1015_v39 = vadd.f32 %v983_v55, %v819_v38  ;;  %v625_v45 = vadd.f32 %v2811_v16, %v587_v47  ;;  %v1074_v46 = vpack.c.bf16 %v1045_v60, %v1044_v5 }
  0xe8   : > { %v477_v15 = vpop.permute.xlu0 %476  ;;  %v822_v55 = vadd.f32 %v790_v58, %v626_v32 }
  0xe9   : > { %v1047_v53 = vmax.f32 %v1015_v39, 0.0  ;;  %v821_v2 = vadd.f32 %v789_v13, %v625_v45  ;;  %2405 = vset.pattern.permute.xlu1 %v2511_v0  ;;  %2194 = vmatprep.mubr.msk.bf16.mxu0 %vm1127_vm0, %v1074_v46  ;;  %v988_v46 = vmul.f32 %v2821_v23, %v2775_v54 }
  0xea   : > { %749 = vperm.xlu1 %2405, %v2673_v19   ;;  %v878_v52 = vpop.permute.xlu1 %877 }
  0xeb   : > { %v1017_v22 = vadd.f32 %v985_v14, %v821_v2  ;;  %v984_v24 = vmul.f32 %v2821_v23, %v878_v52  ;;  %v1075_v25 = vpack.c.bf16 %v1047_v53, %v1046_v17 }
  0xec   : > { %v492_v26 = vpop.permute.xlu0 %491 }
  0xed   : > { %v1016_v29 = vadd.f32 %v984_v24, %v820_v20  ;;  %v1049_v48 = vmax.f32 %v1017_v22, 0.0  ;;  %v593_v13 = vmul.f32 %v2800_v10, %v492_v26 }
  0xee   : > { %753 = vperm.xlu1 %2405, %v2851_v18   ;;  %v886_v19 = vpop.permute.xlu1 %885  ;;  %2195 = vmatmul.mubr.msk.bf16.gmra.mxu0 %vm1127_vm0, %v1075_v25 }
  0xef   : > { %v1048_v6 = vmax.f32 %v1016_v29, 0.0  ;;  %v986_v33 = vmul.f32 %v2821_v23, %v886_v19  ;;  %v631_v53 = vadd.f32 %v2811_v16, %v593_v13 }
  0xf0   : > { %v2894_v34 = vpop.permute.xlu0 %501 }
  0xf1   : > { %v1076_v35 = vpack.c.bf16 %v1049_v48, %v1048_v6  ;;  %v1018_v36 = vadd.f32 %v986_v33, %v822_v55  ;;  %v2417_v6 = vld [vmem:[%s3226_s5 + $0x38] sm:$0xff]  }
  0xf2   : > { %2406 = vset.pattern.permute.xlu1 %v2513_v9  ;;  %v890_v44 = vpop.permute.xlu1 %889  ;;  %2222 = vmatprep.subr.bf16.mxu1 %v2417_v6 }
  0xf3   : > { %v987_v7 = vmul.f32 %v2821_v23, %v890_v44  ;;  %941 = vperm.xlu1 %2406, %v2736_v37   ;;  %2198 = vmatprep.mubr.msk.bf16.mxu0 %vm1127_vm0, %v1076_v35  ;;  %v1050_v57 = vmax.f32 %v1018_v36, 0.0 }
  0xf4   : > { %v2900_v42 = vpop.permute.xlu0 %516 }
  0xf5   : > { %v1019_v49 = vadd.f32 %v987_v7, %v823_v51  ;;  %v595_v7 = vmul.f32 %v2800_v10, %v2894_v34 }
  0xf7   : > { %v1051_v60 = vmax.f32 %v1019_v49, 0.0  ;;  %949 = vperm.xlu1 %2406, %v2851_v18   ;;  %v482_v63 = vpop.permute.xlu1 %481  ;;  %v590_v18 = vmul.f32 %v2800_v10, %v477_v15 }
  0xf8   : > { %v2903_v4 = vpop.permute.xlu0 %531 }
  0xf9   : > { %v1077_v5 = vpack.c.bf16 %v1051_v60, %v1050_v57  ;;  %v633_v57 = vadd.f32 %v2811_v16, %v595_v7 }
  0xfb   : > { %953 = vperm.xlu1 %2406, %v2744_v40   ;;  %v487_v38 = vpop.permute.xlu1 %486  ;;  %2199 = vmatmul.mubr.msk.bf16.gmra.mxu0 %vm1127_vm0, %v1077_v5  ;;  %v628_v40 = vadd.f32 %v2811_v16, %v590_v18  ;;  %v993_v18 = vmul.f32 %v2821_v23, %v2784_v59 }
  0xfc   : > { %v2907_v37 = vpop.permute.xlu0 %541  ;;  %v592_v20 = vmul.f32 %v2800_v10, %v487_v38 }
  0xfe   : > { %v630_v26 = vadd.f32 %v2811_v16, %v592_v20 }
  0xff   : > { %2408 = vset.pattern.permute.xlu1 %v2512_v1  ;;  %v591_v1 = vmul.f32 %v2800_v10, %v482_v63 }
 0x100   : > { %561 = vperm.xlu1 %2408, %v2752_v43   ;;  %v698_v47 = vpop.permute.xlu1 %697  ;;  %v2911_v50 = vpop.permute.xlu0 %556 }
 0x101   : > { %v792_v39 = vmul.f32 %v2802_v11, %v698_v47  ;;  %v629_v52 = vadd.f32 %v2811_v16, %v591_v1 }
 0x103   : > { %v824_v15 = vadd.f32 %v792_v39, %v628_v40 }
 0x104   : > { %566 = vperm.xlu1 %2408, %v410_v61   ;;  %v706_v14 = vpop.permute.xlu1 %705  ;;  %v2915_v12 = vpop.permute.xlu0 %571 }
 0x105   : > { %v1020_v21 = vadd.f32 %v988_v46, %v824_v15  ;;  %v794_v22 = vmul.f32 %v2802_v11, %v706_v14 }
 0x107   : > { %v1052_v29 = vmax.f32 %v1020_v21, 0.0  ;;  %v826_v32 = vadd.f32 %v794_v22, %v630_v26 }
 0x108   : > { %2410 = vset.pattern.permute.xlu1 %v2511_v0  ;;  %v710_v45 = vpop.permute.xlu1 %709  ;;  %v991_v0 = vmul.f32 %v2821_v23, %v2781_v56 }
 0x109   : > { %761 = vperm.xlu1 %2410, %v2707_v27   ;;  %v702_v17 = vpop.permute.xlu0 %701  ;;  %v795_v2 = vmul.f32 %v2802_v11, %v710_v45 }
 0x10a   : > { %v793_v41 = vmul.f32 %v2802_v11, %v702_v17 }
 0x10b   : > { %v827_v27 = vadd.f32 %v795_v2, %v631_v53 }
 0x10c   : > { %v825_v24 = vadd.f32 %v793_v41, %v629_v52 }
 0x10d   : > { %769 = vperm.xlu1 %2410, %v410_v61   ;;  %v898_v54 = vpop.permute.xlu1 %897  ;;  %v1023_v19 = vadd.f32 %v991_v0, %v827_v27 }
 0x10e   : > { %v989_v25 = vmul.f32 %v2821_v23, %v898_v54 }
 0x10f   : > { %v1055_v55 = vmax.f32 %v1023_v19, 0.0  ;;  %v598_v19 = vmul.f32 %v2800_v10, %v2900_v42 }
 0x110   : > { %v1021_v58 = vadd.f32 %v989_v25, %v825_v24 }
 0x111   : > { %773 = vperm.xlu1 %2410, %v2713_v28   ;;  %v902_v31 = vpop.permute.xlu1 %901 }
 0x112   : > { %v1053_v30 = vmax.f32 %v1021_v58, 0.0  ;;  %v990_v56 = vmul.f32 %v2821_v23, %v902_v31  ;;  %v2418_v31 = vld [vmem:[%s3226_s5 + $0x30] sm:$0xff]  }
 0x114   : > { %v1078_v48 = vpack.c.bf16 %v1053_v30, %v1052_v29  ;;  %v1022_v33 = vadd.f32 %v990_v56, %v826_v32  ;;  %v2419_v30 = vld [vmem:[%s3226_s5 + $0x28] sm:$0xff]  }
 0x115   : > { %2412 = vset.pattern.permute.xlu1 %v2513_v9 }
 0x116   : > { %v1054_v35 = vmax.f32 %v1022_v33, 0.0  ;;  %961 = vperm.xlu1 %2412, %v2752_v43   ;;  %v497_v28 = vpop.permute.xlu1 %496  ;;  %2202 = vmatprep.mubr.msk.bf16.mxu0 %vm1127_vm0, %v1078_v48  ;;  %v714_v43 = vpop.permute.xlu0 %713  ;;  %v636_v48 = vadd.f32 %v2811_v16, %v598_v19 }
 0x117   : > { %v594_v9 = vmul.f32 %v2800_v10, %v497_v28  ;;  %v796_v38 = vmul.f32 %v2802_v11, %v714_v43  ;;  %v601_v28 = vmul.f32 %v2800_v10, %v2903_v4  ;;  %v2422_v4 = vld [vmem:[%s3226_s5 + $0x10] sm:$0xff]   ;;  %v999_v43 = vmul.f32 %v2821_v23, %v2792_v3 }
 0x118   : > { %v1079_v44 = vpack.c.bf16 %v1055_v55, %v1054_v35  ;;  %v2420_v55 = vld [vmem:[%s3226_s5 + $0x20] sm:$0xff]  }
 0x119   : > { %v632_v5 = vadd.f32 %v2811_v16, %v594_v9 }
 0x11a   : > { %965 = vperm.xlu1 %2412, %v410_v61   ;;  %v507_v36 = vpop.permute.xlu1 %506  ;;  %2203 = vmatmul.mubr.msk.bf16.gmra.mxu0 %vm1127_vm0, %v1079_v44  ;;  %v726_v39 = vpop.permute.xlu0 %725 }
 0x11b   : > { %v596_v61 = vmul.f32 %v2800_v10, %v507_v36  ;;  %v828_v14 = vadd.f32 %v796_v38, %v632_v5  ;;  %v799_v17 = vmul.f32 %v2802_v11, %v726_v39  ;;  %v2421_v36 = vld [vmem:[%s3226_s5 + $0x18] sm:$0xff]  }
 0x11d   : > { %v634_v15 = vadd.f32 %v2811_v16, %v596_v61 }
 0x11e   : > { %v512_v51 = vpop.permute.xlu1 %511  ;;  %v734_v7 = vpop.permute.xlu0 %733 }
 0x11f   : > { %v597_v40 = vmul.f32 %v2800_v10, %v512_v51 }
 0x121   : > { %v635_v59 = vadd.f32 %v2811_v16, %v597_v40 }
 0x123   : > { %v718_v49 = vpop.permute.xlu1 %717  ;;  %v831_v54 = vadd.f32 %v799_v17, %v635_v59 }
 0x124   : > { %v797_v60 = vmul.f32 %v2802_v11, %v718_v49 }
 0x126   : > { %v829_v47 = vadd.f32 %v797_v60, %v633_v57  ;;  %v639_v57 = vadd.f32 %v2811_v16, %v601_v28  ;;  %v801_v60 = vmul.f32 %v2802_v11, %v734_v7 }
 0x127   : > { %v722_v63 = vpop.permute.xlu1 %721 }
 0x128   : > { %v1025_v1 = vadd.f32 %v993_v18, %v829_v47  ;;  %v798_v45 = vmul.f32 %v2802_v11, %v722_v63  ;;  %v2423_v18 = vld [vmem:[%s3226_s5 + $0x8] sm:$0xff]  }
 0x12a   : > { %v1057_v52 = vmax.f32 %v1025_v1, 0.0  ;;  %v830_v20 = vadd.f32 %v798_v45, %v634_v15 }
 0x12c   : > { %v910_v34 = vpop.permute.xlu1 %909 }
 0x12d   : > { %v992_v13 = vmul.f32 %v2821_v23, %v910_v34 }
 0x12f   : > { %v1024_v46 = vadd.f32 %v992_v13, %v828_v14  ;;  %v2424_v13 = vld [vmem:[%s3226_s5] sm:$0xff]  }
 0x130   : > { %v918_v53 = vpop.permute.xlu1 %917 }
 0x131   : > { %v1056_v2 = vmax.f32 %v1024_v46, 0.0  ;;  %v994_v41 = vmul.f32 %v2821_v23, %v918_v53 }
 0x133   : > { %v1080_v0 = vpack.c.bf16 %v1057_v52, %v1056_v2  ;;  %v1026_v22 = vadd.f32 %v994_v41, %v830_v20 }
 0x134   : > { %v922_v21 = vpop.permute.xlu1 %921 }
 0x135   : > { %v995_v27 = vmul.f32 %v2821_v23, %v922_v21  ;;  %2206 = vmatprep.mubr.msk.bf16.mxu1 %vm1127_vm0, %v1080_v0  ;;  %v1058_v25 = vmax.f32 %v1026_v22, 0.0  ;;  %v603_v21 = vmul.f32 %v2800_v10, %v2907_v37 }
 0x137   : > { %v1027_v24 = vadd.f32 %v995_v27, %v831_v54  ;;  %v641_v22 = vadd.f32 %v2811_v16, %v603_v21 }
 0x139   : > { %v1059_v26 = vmax.f32 %v1027_v24, 0.0  ;;  %v522_v58 = vpop.permute.xlu1 %521 }
 0x13a   : > { %v599_v51 = vmul.f32 %v2800_v10, %v522_v58 }
 0x13b   : > { %v1081_v29 = vpack.c.bf16 %v1059_v26, %v1058_v25  ;;  %v1001_v25 = vmul.f32 %v2821_v23, %v2798_v8  ;;  %v746_v26 = vpop.permute.xlu0 %745 }
 0x13c   : > { %v637_v9 = vadd.f32 %v2811_v16, %v599_v51  ;;  %v804_v19 = vmul.f32 %v2802_v11, %v746_v26 }
 0x13d   : > { %v527_v32 = vpop.permute.xlu1 %526  ;;  %2207 = vmatmul.mubr.msk.bf16.vlgmr.msra.gmra.mxu1 %vm1127_vm0, %v1081_v29 }
 0x13e   : > { %2223 = vmatpush3.bf16.msra.mxu1 %v2417_v6  ;;  %v996_v6 = vmul.f32 %v2821_v23, %v2790_v62  ;;  %v600_v5 = vmul.f32 %v2800_v10, %v527_v32  ;;  %v833_v61 = vadd.f32 %v801_v60, %v637_v9 }
 0x13f   : > { %2224 = vmatprep.subr.bf16.mxu1 %v2418_v31 }
 0x140   : > { %v638_v40 = vadd.f32 %v2811_v16, %v600_v5 }
 0x142   : > { %v730_v56 = vpop.permute.xlu1 %729  ;;  %2225 = vmatpush3.bf16.msra.mxu1 %v2418_v31 }
 0x143   : > { %v800_v33 = vmul.f32 %v2802_v11, %v730_v56  ;;  %2226 = vmatprep.subr.bf16.mxu1 %v2419_v30 }
 0x145   : > { %v832_v42 = vadd.f32 %v800_v33, %v636_v48  ;;  %v758_v33 = vpop.permute.xlu0 %757 }
 0x146   : > { %v738_v35 = vpop.permute.xlu1 %737  ;;  %2227 = vmatpush3.bf16.msra.mxu1 %v2419_v30 }
 0x147   : > { %v1028_v44 = vadd.f32 %v996_v6, %v832_v42  ;;  %2228 = vmatprep.subr.bf16.mxu1 %v2420_v55  ;;  %v802_v34 = vmul.f32 %v2802_v11, %v738_v35  ;;  %v807_v35 = vmul.f32 %v2802_v11, %v758_v33 }
 0x149   : > { %v1060_v1 = vmax.f32 %v1028_v44, 0.0  ;;  %v834_v45 = vadd.f32 %v802_v34, %v638_v40  ;;  %v766_v34 = vpop.permute.xlu0 %765 }
 0x14a   : > { %v742_v49 = vpop.permute.xlu1 %741  ;;  %2229 = vmatpush3.bf16.msra.mxu1 %v2420_v55 }
 0x14b   : > { %v803_v62 = vmul.f32 %v2802_v11, %v742_v49  ;;  %2230 = vmatprep.subr.bf16.mxu1 %v2421_v36 }
 0x14d   : > { %v835_v63 = vadd.f32 %v803_v62, %v639_v57 }
 0x14e   : > { %2231 = vmatpush3.bf16.msra.mxu1 %v2421_v36 }
 0x14f   : > { %v1031_v38 = vadd.f32 %v999_v43, %v835_v63  ;;  %v930_v47 = vpop.permute.xlu1 %929  ;;  %2232 = vmatprep.subr.bf16.mxu1 %v2422_v4 }
 0x150   : > { %v997_v14 = vmul.f32 %v2821_v23, %v930_v47 }
 0x151   : > { %v1063_v59 = vmax.f32 %v1031_v38, 0.0 }
 0x152   : > { %v1029_v39 = vadd.f32 %v997_v14, %v833_v61  ;;  %2233 = vmatpush3.bf16.msra.mxu1 %v2422_v4  ;;  %v606_v14 = vmul.f32 %v2800_v10, %v2911_v50 }
 0x153   : > { %v934_v3 = vpop.permute.xlu1 %933  ;;  %2234 = vmatprep.subr.bf16.mxu1 %v2423_v18 }
 0x154   : > { %v1061_v46 = vmax.f32 %v1029_v39, 0.0  ;;  %v998_v15 = vmul.f32 %v2821_v23, %v934_v3 }
 0x156   : > { %v1082_v17 = vpack.c.bf16 %v1061_v46, %v1060_v1  ;;  %v1030_v53 = vadd.f32 %v998_v15, %v834_v45  ;;  %2235 = vmatpush3.bf16.msra.mxu1 %v2423_v18  ;;  %v644_v1 = vadd.f32 %v2811_v16, %v606_v14  ;;  %v609_v45 = vmul.f32 %v2800_v10, %v2915_v12 }
 0x157   : > { %2236 = vmatprep.subr.bf16.mxu1 %v2424_v13 }
 0x158   : > { %v1062_v2 = vmax.f32 %v1030_v53, 0.0  ;;  %v537_v41 = vpop.permute.xlu1 %536  ;;  %2210 = vmatprep.mubr.msk.bf16.mxu1 %vm1127_vm0, %v1082_v17 }
 0x159   : > { %v602_v24 = vmul.f32 %v2800_v10, %v537_v41  ;;  %v809_v41 = vmul.f32 %v2802_v11, %v766_v34 }
 0x15a   : > { %v1083_v52 = vpack.c.bf16 %v1063_v59, %v1062_v2  ;;  %2237 = vmatpush3.bf16.msra.mxu1 %v2424_v13  ;;  %v958_v13 = vpop.permute.xlu0 %957  ;;  %v647_v2 = vadd.f32 %v2811_v16, %v609_v45 }
 0x15b   : > { %v640_v32 = vadd.f32 %v2811_v16, %v602_v24  ;;  %v1004_v17 = vmul.f32 %v2821_v23, %v958_v13 }
 0x15c   : > { %v547_v20 = vpop.permute.xlu1 %546  ;;  %2211 = vmatmul.mubr.msk.bf16.gmra.mxu1 %vm1127_vm0, %v1083_v52 }
 0x15d   : > { %v604_v37 = vmul.f32 %v2800_v10, %v547_v20  ;;  %v836_v56 = vadd.f32 %v804_v19, %v640_v32 }
 0x15e   : > { %v970_v50 = vpop.permute.xlu0 %969 }
 0x15f   : > { %v642_v42 = vadd.f32 %v2811_v16, %v604_v37 }
 0x160   : > { %v552_v0 = vpop.permute.xlu1 %551 }
 0x161   : > { %v605_v48 = vmul.f32 %v2800_v10, %v552_v0  ;;  %v1007_v0 = vmul.f32 %v2821_v23, %v970_v50 }
 0x163   : > { %v643_v44 = vadd.f32 %v2811_v16, %v605_v48 }
 0x165   : > { %v750_v54 = vpop.permute.xlu1 %749  ;;  %v839_v4 = vadd.f32 %v807_v35, %v643_v44 }
 0x166   : > { %v805_v27 = vmul.f32 %v2802_v11, %v750_v54 }
 0x168   : > { %v837_v58 = vadd.f32 %v805_v27, %v641_v22 }
 0x169   : > { %v754_v29 = vpop.permute.xlu1 %753 }
 0x16a   : > { %v1033_v31 = vadd.f32 %v1001_v25, %v837_v58  ;;  %v806_v6 = vmul.f32 %v2802_v11, %v754_v29 }
 0x16c   : > { %v1065_v36 = vmax.f32 %v1033_v31, 0.0  ;;  %v838_v49 = vadd.f32 %v806_v6, %v642_v42 }
 0x16e   : > { %v942_v30 = vpop.permute.xlu1 %941 }
 0x16f   : > { %v1000_v55 = vmul.f32 %v2821_v23, %v942_v30 }
 0x171   : > { %v1032_v8 = vadd.f32 %v1000_v55, %v836_v56 }
 0x172   : > { %v950_v28 = vpop.permute.xlu1 %949 }
 0x173   : > { %v1064_v51 = vmax.f32 %v1032_v8, 0.0  ;;  %v1002_v7 = vmul.f32 %v2821_v23, %v950_v28 }
 0x175   : > { %v1084_v57 = vpack.c.bf16 %v1065_v36, %v1064_v51  ;;  %v1034_v9 = vadd.f32 %v1002_v7, %v838_v49 }
 0x176   : > { %v954_v62 = vpop.permute.xlu1 %953 }
 0x177   : > { %v1003_v60 = vmul.f32 %v2821_v23, %v954_v62  ;;  %2214 = vmatprep.mubr.msk.bf16.mxu1 %vm1127_vm0, %v1084_v57  ;;  %v1066_v63 = vmax.f32 %v1034_v9, 0.0 }
 0x179   : > { %v1035_v43 = vadd.f32 %v1003_v60, %v839_v4 }
 0x17b   : > { %v1067_v5 = vmax.f32 %v1035_v43, 0.0  ;;  %v562_v38 = vpop.permute.xlu1 %561 }
 0x17c   : > { %v607_v3 = vmul.f32 %v2800_v10, %v562_v38 }
 0x17d   : > { %v1085_v47 = vpack.c.bf16 %v1067_v5, %v1066_v63 }
 0x17e   : > { %v645_v53 = vadd.f32 %v2811_v16, %v607_v3 }
 0x17f   : > { %v567_v18 = vpop.permute.xlu1 %566  ;;  %2215 = vmatmul.mubr.msk.bf16.gmra.mxu1 %vm1127_vm0, %v1085_v47 }
 0x180   : > { %v608_v52 = vmul.f32 %v2800_v10, %v567_v18  ;;  %v841_v22 = vadd.f32 %v809_v41, %v645_v53 }
 0x182   : > { %v646_v24 = vadd.f32 %v2811_v16, %v608_v52  ;;  %v3050_v16 = vld [vmem:[%s3225_s4] ss:$0 sm:$0xff] }
 0x184   : > { %v762_v61 = vpop.permute.xlu1 %761 }
 0x185   : > { %v808_v39 = vmul.f32 %v2802_v11, %v762_v61 }
 0x187   : > { %v840_v15 = vadd.f32 %v808_v39, %v644_v1 }
 0x188   : > { %v770_v40 = vpop.permute.xlu1 %769 }
 0x189   : > { %v1036_v20 = vadd.f32 %v1004_v17, %v840_v15  ;;  %v810_v12 = vmul.f32 %v2802_v11, %v770_v40 }
 0x18b   : > { %v1068_v26 = vmax.f32 %v1036_v20, 0.0  ;;  %v842_v29 = vadd.f32 %v810_v12, %v646_v24 }
 0x18c   : > { %v774_v46 = vpop.permute.xlu1 %773 }
 0x18d   : > { %v811_v59 = vmul.f32 %v2802_v11, %v774_v46 }
 0x18f   : > { %v843_v54 = vadd.f32 %v811_v59, %v647_v2 }
 0x191   : > { %v962_v21 = vpop.permute.xlu1 %961  ;;  %v1039_v31 = vadd.f32 %v1007_v0, %v843_v54 }
 0x192   : > { %v1005_v27 = vmul.f32 %v2821_v23, %v962_v21 }
 0x193   : > { %v1071_v30 = vmax.f32 %v1039_v31, 0.0  ;;  %v2426_v31 = vld [vmem:[%s3228_s7 + $0x30] sm:$0xff]  }
 0x194   : > { %v1037_v25 = vadd.f32 %v1005_v27, %v841_v22  ;;  %v2425_v27 = vld [vmem:[%s3228_s7 + $0x38] sm:$0xff]  }
 0x195   : > { %v966_v58 = vpop.permute.xlu1 %965  ;;  %2270 = vmatprep.subr.bf16.mxu0 %v2425_v27 }
 0x196   : > { %v1069_v32 = vmax.f32 %v1037_v25, 0.0  ;;  %v1006_v10 = vmul.f32 %v2821_v23, %v966_v58  ;;  %2271 = vmatpush3.bf16.msra.mxu0 %v2425_v27 }
 0x197   : > { %2272 = vmatprep.subr.bf16.mxu0 %v2426_v31 }
 0x198   : > { %v1086_v19 = vpack.c.bf16 %v1069_v32, %v1068_v26  ;;  %v1038_v37 = vadd.f32 %v1006_v10, %v842_v29 }
 0x19a   : > { %v1070_v56 = vmax.f32 %v1038_v37, 0.0  ;;  %2218 = vmatprep.mubr.msk.bf16.mxu1 %vm1127_vm0, %v1086_v19  ;;  %2273 = vmatpush3.bf16.msra.mxu0 %v2426_v31  ;;  %v2427_v19 = vld [vmem:[%s3228_s7 + $0x28] sm:$0xff]   ;;  %v2428_v37 = vld [vmem:[%s3228_s7 + $0x20] sm:$0xff]  }
 0x19b   : > { %2274 = vmatprep.subr.bf16.mxu0 %v2427_v19 }
 0x19c   : > { %v1087_v11 = vpack.c.bf16 %v1071_v30, %v1070_v56  ;;  %v2429_v30 = vld [vmem:[%s3228_s7 + $0x18] sm:$0xff]   ;;  %v2430_v56 = vld [vmem:[%s3228_s7 + $0x10] sm:$0xff]  }
 0x19e   : > { %2219 = vmatmul.mubr.msk.bf16.gmra.mxu1 %vm1127_vm0, %v1087_v11  ;;  %2275 = vmatpush3.bf16.msra.mxu0 %v2427_v19  ;;  %v2431_v11 = vld [vmem:[%s3228_s7 + $0x8] sm:$0xff]  }
 0x19f   : > { %2276 = vmatprep.subr.bf16.mxu0 %v2428_v37 }
 0x1a2   : > { %2277 = vmatpush3.bf16.msra.mxu0 %v2428_v37  ;;  %v3111_v37 = vld [vmem:[%s3227_s6] ss:$0 sm:$0xff] }
 0x1a3   : > { %2278 = vmatprep.subr.bf16.mxu0 %v2429_v30 }
 0x1a6   : > { %v2192_v48 = vpop.f32.mrf.mxu0  ;;  %2279 = vmatpush3.bf16.msra.mxu0 %v2429_v30 }
 0x1a7   : > { %v1219_v8 = vadd.f32 %v2192_v48, %v3050_v16  ;;  %2280 = vmatprep.subr.bf16.mxu0 %v2430_v56  ;;  %v2432_v48 = vld [vmem:[%s3228_s7] sm:$0xff]  }
 0x1a8   : > { %v1210_v33 = vpop.f32.mrf.mxu0 }
 0x1a9   : > { %v1211_v6 = vadd.f32 %v3050_v16, %v1210_v33  ;;  %v1339_v7 = vmax.f32 %v1219_v8, 0.0 }
 0x1aa   : > { %v2193_v55 = vpop.f32.mrf.mxu0  ;;  %2281 = vmatpush3.bf16.msra.mxu0 %v2430_v56 }
 0x1ab   : > { %v1222_v23 = vadd.f32 %v2193_v55, %v3050_v16  ;;  %v1337_v36 = vmax.f32 %v1211_v6, 0.0  ;;  %2282 = vmatprep.subr.bf16.mxu0 %v2431_v11 }
 0x1ac   : > { %v1213_v42 = vpop.f32.mrf.mxu0 }
 0x1ad   : > { %v1214_v35 = vadd.f32 %v3050_v16, %v1213_v42  ;;  %v1340_v28 = vmax.f32 %v1222_v23, 0.0 }
 0x1ae   : > { %v2196_v44 = vpop.f32.mrf.mxu0  ;;  %2283 = vmatpush3.bf16.msra.mxu0 %v2431_v11 }
 0x1af   : > { %v1338_v51 = vmax.f32 %v1214_v35, 0.0  ;;  %v1370_v62 = vpack.c.bf16 %v1340_v28, %v1339_v7  ;;  %v1235_v43 = vadd.f32 %v2196_v44, %v3050_v16  ;;  %2284 = vmatprep.subr.bf16.mxu0 %v2432_v48 }
 0x1b0   : > { %v1226_v49 = vpop.f32.mrf.mxu0 }
 0x1b1   : > { %v1369_v57 = vpack.c.bf16 %v1338_v51, %v1337_v36  ;;  %v1227_v9 = vadd.f32 %v3050_v16, %v1226_v49  ;;  %v1343_v61 = vmax.f32 %v1235_v43, 0.0 }
 0x1b2   : > { %v2197_v4 = vpop.f32.mrf.mxu0  ;;  %2285 = vmatpush3.bf16.msra.mxu0 %v2432_v48 }
 0x1b3   : > { %v1238_v60 = vadd.f32 %v2197_v4, %v3050_v16  ;;  %2238 = vmatprep.mubr.bf16.mxu1 %v1369_v57  ;;  %v1341_v47 = vmax.f32 %v1227_v9, 0.0 }
 0x1b4   : > { %v1229_v63 = vpop.f32.mrf.mxu0  ;;  %2239 = vmatmul.mubr.bf16.vlgmr.msra.gmra.mxu1 %v1370_v62 }
 0x1b5   : > { %v1230_v5 = vadd.f32 %v3050_v16, %v1229_v63  ;;  %v1344_v38 = vmax.f32 %v1238_v60, 0.0 }
 0x1b7   : > { %v1342_v18 = vmax.f32 %v1230_v5, 0.0  ;;  %v1372_v14 = vpack.c.bf16 %v1344_v38, %v1343_v61 }
 0x1b9   : > { %v1371_v34 = vpack.c.bf16 %v1342_v18, %v1341_v47 }
 0x1bb   : > { %v2200_v40 = vpop.f32.mrf.mxu0  ;;  %2242 = vmatprep.mubr.bf16.mxu1 %v1371_v34 }
 0x1bc   : > { %2243 = vmatmul.mubr.bf16.gmra.mxu1 %v1372_v14  ;;  %v1251_v45 = vadd.f32 %v2200_v40, %v3050_v16 }
 0x1bd   : > { %v1242_v39 = vpop.f32.mrf.mxu0 }
 0x1be   : > { %v1243_v13 = vadd.f32 %v3050_v16, %v1242_v39  ;;  %v1347_v50 = vmax.f32 %v1251_v45, 0.0 }
 0x1bf   : > { %v2201_v3 = vpop.f32.mrf.mxu0 }
 0x1c0   : > { %v1254_v1 = vadd.f32 %v2201_v3, %v3050_v16  ;;  %v1345_v53 = vmax.f32 %v1243_v13, 0.0 }
 0x1c1   : > { %v1245_v46 = vpop.f32.mrf.mxu0 }
 0x1c2   : > { %v1246_v15 = vadd.f32 %v3050_v16, %v1245_v46  ;;  %v1348_v17 = vmax.f32 %v1254_v1, 0.0 }
 0x1c4   : > { %v1346_v59 = vmax.f32 %v1246_v15, 0.0  ;;  %v1374_v41 = vpack.c.bf16 %v1348_v17, %v1347_v50 }
 0x1c6   : > { %v1373_v2 = vpack.c.bf16 %v1346_v59, %v1345_v53 }
 0x1c8   : > { %2246 = vmatprep.mubr.bf16.mxu1 %v1373_v2 }
 0x1c9   : > { %2247 = vmatmul.mubr.bf16.gmra.mxu1 %v1374_v41 }
 0x1da   : > { %v2204_v52 = vpop.f32.mrf.mxu0 }
 0x1db   : > { %v1267_v54 = vadd.f32 %v2204_v52, %v3050_v16 }
 0x1dc   : > { %v1258_v20 = vpop.f32.mrf.mxu0 }
 0x1dd   : > { %v1259_v21 = vadd.f32 %v3050_v16, %v1258_v20  ;;  %v1351_v29 = vmax.f32 %v1267_v54, 0.0 }
 0x1de   : > { %v2205_v0 = vpop.f32.mrf.mxu0 }
 0x1df   : > { %v1270_v12 = vadd.f32 %v2205_v0, %v3050_v16  ;;  %v1349_v26 = vmax.f32 %v1259_v21, 0.0 }
 0x1e0   : > { %v1261_v22 = vpop.f32.mrf.mxu0 }
 0x1e1   : > { %v1262_v24 = vadd.f32 %v3050_v16, %v1261_v22  ;;  %v1352_v25 = vmax.f32 %v1270_v12, 0.0 }
 0x1e3   : > { %v1350_v58 = vmax.f32 %v1262_v24, 0.0  ;;  %v1376_v10 = vpack.c.bf16 %v1352_v25, %v1351_v29 }
 0x1e5   : > { %v1375_v32 = vpack.c.bf16 %v1350_v58, %v1349_v26 }
 0x1e7   : > { %2250 = vmatprep.mubr.bf16.mxu1 %v1375_v32 }
 0x1e8   : > { %2251 = vmatmul.mubr.bf16.gmra.mxu1 %v1376_v10 }
 0x1fd   : > { %v2208_v33 = vpop.f32.mrf.mxu1 }
 0x1fe   : > { %v1283_v42 = vadd.f32 %v2208_v33, %v3050_v16 }
 0x1ff   : > { %v1274_v55 = vpop.f32.mrf.mxu1 }
 0x200   : > { %v1275_v23 = vadd.f32 %v3050_v16, %v1274_v55  ;;  %v1355_v7 = vmax.f32 %v1283_v42, 0.0 }
 0x201   : > { %v2209_v6 = vpop.f32.mrf.mxu1 }
 0x202   : > { %v1286_v8 = vadd.f32 %v2209_v6, %v3050_v16  ;;  %v1353_v36 = vmax.f32 %v1275_v23, 0.0 }
 0x203   : > { %v1277_v35 = vpop.f32.mrf.mxu1 }
 0x204   : > { %v1278_v28 = vadd.f32 %v3050_v16, %v1277_v35  ;;  %v1356_v44 = vmax.f32 %v1286_v8, 0.0 }
 0x206   : > { %v1354_v51 = vmax.f32 %v1278_v28, 0.0  ;;  %v1378_v57 = vpack.c.bf16 %v1356_v44, %v1355_v7 }
 0x208   : > { %v1377_v49 = vpack.c.bf16 %v1354_v51, %v1353_v36 }
 0x20a   : > { %2254 = vmatprep.mubr.bf16.mxu1 %v1377_v49 }
 0x20b   : > { %2255 = vmatmul.mubr.bf16.gmra.mxu1 %v1378_v57 }
 0x21c   : > { %v2212_v62 = vpop.f32.mrf.mxu1 }
 0x21d   : > { %v1299_v63 = vadd.f32 %v2212_v62, %v3050_v16 }
 0x21e   : > { %v1290_v4 = vpop.f32.mrf.mxu1 }
 0x21f   : > { %v1291_v60 = vadd.f32 %v3050_v16, %v1290_v4  ;;  %v1359_v34 = vmax.f32 %v1299_v63, 0.0 }
 0x220   : > { %v2213_v9 = vpop.f32.mrf.mxu1 }
 0x221   : > { %v1302_v43 = vadd.f32 %v2213_v9, %v3050_v16  ;;  %v1357_v18 = vmax.f32 %v1291_v60, 0.0 }
 0x222   : > { %v1293_v5 = vpop.f32.mrf.mxu1 }
 0x223   : > { %v1294_v38 = vadd.f32 %v3050_v16, %v1293_v5  ;;  %v1360_v47 = vmax.f32 %v1302_v43, 0.0 }
 0x225   : > { %v1358_v61 = vmax.f32 %v1294_v38, 0.0  ;;  %v1380_v40 = vpack.c.bf16 %v1360_v47, %v1359_v34 }
 0x227   : > { %v1379_v14 = vpack.c.bf16 %v1358_v61, %v1357_v18 }
 0x229   : > { %2258 = vmatprep.mubr.bf16.mxu1 %v1379_v14 }
 0x22a   : > { %2259 = vmatmul.mubr.bf16.gmra.mxu1 %v1380_v40 }
 0x23f   : > { %v2216_v39 = vpop.f32.mrf.mxu1 }
 0x240   : > { %v1315_v46 = vadd.f32 %v2216_v39, %v3050_v16 }
 0x241   : > { %v1306_v3 = vpop.f32.mrf.mxu1 }
 0x242   : > { %v1307_v1 = vadd.f32 %v3050_v16, %v1306_v3  ;;  %v1363_v2 = vmax.f32 %v1315_v46, 0.0 }
 0x243   : > { %v2217_v13 = vpop.f32.mrf.mxu1 }
 0x244   : > { %v1318_v45 = vadd.f32 %v2217_v13, %v3050_v16  ;;  %v1361_v59 = vmax.f32 %v1307_v1, 0.0 }
 0x245   : > { %v1309_v15 = vpop.f32.mrf.mxu1 }
 0x246   : > { %v1310_v17 = vadd.f32 %v3050_v16, %v1309_v15  ;;  %v1364_v53 = vmax.f32 %v1318_v45, 0.0 }
 0x248   : > { %v1362_v50 = vmax.f32 %v1310_v17, 0.0  ;;  %v1382_v52 = vpack.c.bf16 %v1364_v53, %v1363_v2 }
 0x24a   : > { %v1381_v41 = vpack.c.bf16 %v1362_v50, %v1361_v59 }
 0x24c   : > { %2262 = vmatprep.mubr.bf16.mxu1 %v1381_v41 }
 0x24d   : > { %2263 = vmatmul.mubr.bf16.gmra.mxu1 %v1382_v52 }
 0x25e   : > { %v2220_v20 = vpop.f32.mrf.mxu1 }
 0x25f   : > { %v1331_v22 = vadd.f32 %v2220_v20, %v3050_v16 }
 0x260   : > { %v1322_v0 = vpop.f32.mrf.mxu1 }
 0x261   : > { %v1323_v12 = vadd.f32 %v3050_v16, %v1322_v0  ;;  %v1367_v29 = vmax.f32 %v1331_v22, 0.0 }
 0x262   : > { %v2221_v21 = vpop.f32.mrf.mxu1 }
 0x263   : > { %v1334_v54 = vadd.f32 %v2221_v21, %v3050_v16  ;;  %v1365_v26 = vmax.f32 %v1323_v12, 0.0 }
 0x264   : > { %v1325_v27 = vpop.f32.mrf.mxu1 }
 0x265   : > { %v1326_v24 = vadd.f32 %v3050_v16, %v1325_v27  ;;  %v1368_v25 = vmax.f32 %v1334_v54, 0.0 }
 0x267   : > { %v1366_v58 = vmax.f32 %v1326_v24, 0.0  ;;  %v1384_v32 = vpack.c.bf16 %v1368_v25, %v1367_v29 }
 0x269   : > { %v1383_v31 = vpack.c.bf16 %v1366_v58, %v1365_v26 }
 0x26b   : > { %2266 = vmatprep.mubr.bf16.mxu1 %v1383_v31 }
 0x26c   : > { %2267 = vmatmul.mubr.bf16.gmra.mxu1 %v1384_v32 }
 0x274   : > { %v2240_v10 = vpop.f32.mrf.mxu1 }
 0x275   : > { %v1499_v11 = vadd.f32 %v2240_v10, %v3111_v37 }
 0x276   : > { %v1490_v19 = vpop.f32.mrf.mxu1 }
 0x277   : > { %v1491_v56 = vadd.f32 %v3111_v37, %v1490_v19  ;;  %v1619_v42 = vmax.f32 %v1499_v11, 0.0 }
 0x278   : > { %v2241_v30 = vpop.f32.mrf.mxu1 }
 0x279   : > { %v1502_v16 = vadd.f32 %v2241_v30, %v3111_v37  ;;  %v1617_v23 = vmax.f32 %v1491_v56, 0.0 }
 0x27a   : > { %v1493_v48 = vpop.f32.mrf.mxu1 }
 0x27b   : > { %v1494_v33 = vadd.f32 %v3111_v37, %v1493_v48  ;;  %v1620_v55 = vmax.f32 %v1502_v16, 0.0 }
 0x27c   : > { %v2244_v6 = vpop.f32.mrf.mxu1 }
 0x27d   : > { %v1618_v8 = vmax.f32 %v1494_v33, 0.0  ;;  %v1650_v44 = vpack.c.bf16 %v1620_v55, %v1619_v42  ;;  %v1515_v49 = vadd.f32 %v2244_v6, %v3111_v37 }
 0x27e   : > { %v1506_v35 = vpop.f32.mrf.mxu1 }
 0x27f   : > { %v1649_v28 = vpack.c.bf16 %v1618_v8, %v1617_v23  ;;  %v1507_v51 = vadd.f32 %v3111_v37, %v1506_v35  ;;  %v1623_v43 = vmax.f32 %v1515_v49, 0.0 }
 0x280   : > { %v2245_v36 = vpop.f32.mrf.mxu1 }
 0x281   : > { %v1518_v7 = vadd.f32 %v2245_v36, %v3111_v37  ;;  %2286 = vmatprep.mubr.bf16.mxu0 %v1649_v28  ;;  %v1621_v9 = vmax.f32 %v1507_v51, 0.0 }
 0x282   : > { %v1509_v57 = vpop.f32.mrf.mxu1  ;;  %2287 = vmatmul.mubr.bf16.vlgmr.msra.gmra.mxu0 %v1650_v44 }
 0x283   : > { %v1510_v62 = vadd.f32 %v3111_v37, %v1509_v57  ;;  %v1624_v4 = vmax.f32 %v1518_v7, 0.0 }
 0x285   : > { %v1622_v60 = vmax.f32 %v1510_v62, 0.0  ;;  %v1652_v5 = vpack.c.bf16 %v1624_v4, %v1623_v43 }
 0x287   : > { %v1651_v63 = vpack.c.bf16 %v1622_v60, %v1621_v9 }
 0x289   : > { %v2248_v38 = vpop.f32.mrf.mxu1  ;;  %2290 = vmatprep.mubr.bf16.mxu0 %v1651_v63 }
 0x28a   : > { %2291 = vmatmul.mubr.bf16.gmra.mxu0 %v1652_v5  ;;  %v1531_v14 = vadd.f32 %v2248_v38, %v3111_v37 }
 0x28b   : > { %v1522_v47 = vpop.f32.mrf.mxu1 }
 0x28c   : > { %v1523_v61 = vadd.f32 %v3111_v37, %v1522_v47  ;;  %v1627_v45 = vmax.f32 %v1531_v14, 0.0 }
 0x28d   : > { %v2249_v18 = vpop.f32.mrf.mxu1 }
 0x28e   : > { %v1534_v34 = vadd.f32 %v2249_v18, %v3111_v37  ;;  %v1625_v13 = vmax.f32 %v1523_v61, 0.0 }
 0x28f   : > { %v1525_v40 = vpop.f32.mrf.mxu1 }
 0x290   : > { %v1526_v39 = vadd.f32 %v3111_v37, %v1525_v40  ;;  %v1628_v3 = vmax.f32 %v1534_v34, 0.0 }
 0x292   : > { %v1626_v1 = vmax.f32 %v1526_v39, 0.0  ;;  %v1654_v15 = vpack.c.bf16 %v1628_v3, %v1627_v45 }
 0x294   : > { %v1653_v46 = vpack.c.bf16 %v1626_v1, %v1625_v13 }
 0x296   : > { %2294 = vmatprep.mubr.bf16.mxu0 %v1653_v46 }
 0x297   : > { %2295 = vmatmul.mubr.bf16.gmra.mxu0 %v1654_v15 }
 0x2a8   : > { %v2252_v17 = vpop.f32.mrf.mxu1 }
 0x2a9   : > { %v1547_v41 = vadd.f32 %v2252_v17, %v3111_v37 }
 0x2aa   : > { %v1538_v53 = vpop.f32.mrf.mxu1 }
 0x2ab   : > { %v1539_v50 = vadd.f32 %v3111_v37, %v1538_v53  ;;  %v1631_v54 = vmax.f32 %v1547_v41, 0.0 }
 0x2ac   : > { %v2253_v59 = vpop.f32.mrf.mxu1 }
 0x2ad   : > { %v1550_v2 = vadd.f32 %v2253_v59, %v3111_v37  ;;  %v1629_v21 = vmax.f32 %v1539_v50, 0.0 }
 0x2ae   : > { %v1541_v52 = vpop.f32.mrf.mxu1 }
 0x2af   : > { %v1542_v20 = vadd.f32 %v3111_v37, %v1541_v52  ;;  %v1632_v0 = vmax.f32 %v1550_v2, 0.0 }
 0x2b1   : > { %v1630_v12 = vmax.f32 %v1542_v20, 0.0  ;;  %v1656_v27 = vpack.c.bf16 %v1632_v0, %v1631_v54 }
 0x2b3   : > { %v1655_v22 = vpack.c.bf16 %v1630_v12, %v1629_v21 }
 0x2b5   : > { %2298 = vmatprep.mubr.bf16.mxu0 %v1655_v22 }
 0x2b6   : > { %2299 = vmatmul.mubr.bf16.gmra.mxu0 %v1656_v27 }
 0x2cb   : > { %v2256_v24 = vpop.f32.mrf.mxu1 }
 0x2cc   : > { %v1563_v31 = vadd.f32 %v2256_v24, %v3111_v37 }
 0x2cd   : > { %v1554_v25 = vpop.f32.mrf.mxu1 }
 0x2ce   : > { %v1555_v58 = vadd.f32 %v3111_v37, %v1554_v25  ;;  %v1635_v16 = vmax.f32 %v1563_v31, 0.0 }
 0x2cf   : > { %v2257_v26 = vpop.f32.mrf.mxu1 }
 0x2d0   : > { %v1566_v29 = vadd.f32 %v2257_v26, %v3111_v37  ;;  %v1633_v30 = vmax.f32 %v1555_v58, 0.0 }
 0x2d1   : > { %v1557_v32 = vpop.f32.mrf.mxu1 }
 0x2d2   : > { %v1558_v10 = vadd.f32 %v3111_v37, %v1557_v32  ;;  %v1636_v19 = vmax.f32 %v1566_v29, 0.0 }
 0x2d4   : > { %v1634_v56 = vmax.f32 %v1558_v10, 0.0  ;;  %v1658_v48 = vpack.c.bf16 %v1636_v19, %v1635_v16 }
 0x2d6   : > { %v1657_v11 = vpack.c.bf16 %v1634_v56, %v1633_v30 }
 0x2d8   : > { %2302 = vmatprep.mubr.bf16.mxu0 %v1657_v11 }
 0x2d9   : > { %2303 = vmatmul.mubr.bf16.gmra.mxu0 %v1658_v48 }
 0x2ea   : > { %v2260_v33 = vpop.f32.mrf.mxu1 }
 0x2eb   : > { %v1579_v42 = vadd.f32 %v2260_v33, %v3111_v37 }
 0x2ec   : > { %v1570_v55 = vpop.f32.mrf.mxu1 }
 0x2ed   : > { %v1571_v23 = vadd.f32 %v3111_v37, %v1570_v55  ;;  %v1639_v7 = vmax.f32 %v1579_v42, 0.0  ;;  %v3148_v55 = vld [vmem:[%s3229_s8] ss:$0 sm:$0xff] }
 0x2ee   : > { %v2261_v6 = vpop.f32.mrf.mxu1 }
 0x2ef   : > { %v1582_v8 = vadd.f32 %v2261_v6, %v3111_v37  ;;  %v1637_v36 = vmax.f32 %v1571_v23, 0.0 }
 0x2f0   : > { %v1573_v35 = vpop.f32.mrf.mxu1 }
 0x2f1   : > { %v1574_v28 = vadd.f32 %v3111_v37, %v1573_v35  ;;  %v1640_v44 = vmax.f32 %v1582_v8, 0.0 }
 0x2f3   : > { %v1638_v51 = vmax.f32 %v1574_v28, 0.0  ;;  %v1660_v57 = vpack.c.bf16 %v1640_v44, %v1639_v7 }
 0x2f5   : > { %v1659_v49 = vpack.c.bf16 %v1638_v51, %v1637_v36 }
 0x2f7   : > { %2306 = vmatprep.mubr.bf16.mxu0 %v1659_v49 }
 0x2f8   : > { %2307 = vmatmul.mubr.bf16.gmra.mxu0 %v1660_v57 }
 0x30d   : > { %v2264_v62 = vpop.f32.mrf.mxu1 }
 0x30e   : > { %v1595_v63 = vadd.f32 %v2264_v62, %v3111_v37 }
 0x30f   : > { %v1586_v4 = vpop.f32.mrf.mxu1 }
 0x310   : > { %v1587_v60 = vadd.f32 %v3111_v37, %v1586_v4  ;;  %v1643_v34 = vmax.f32 %v1595_v63, 0.0 }
 0x311   : > { %v2265_v9 = vpop.f32.mrf.mxu1 }
 0x312   : > { %v1598_v43 = vadd.f32 %v2265_v9, %v3111_v37  ;;  %v1641_v18 = vmax.f32 %v1587_v60, 0.0 }
 0x313   : > { %v1589_v5 = vpop.f32.mrf.mxu1 }
 0x314   : > { %v1590_v38 = vadd.f32 %v3111_v37, %v1589_v5  ;;  %v1644_v47 = vmax.f32 %v1598_v43, 0.0 }
 0x316   : > { %v1642_v61 = vmax.f32 %v1590_v38, 0.0  ;;  %v1662_v40 = vpack.c.bf16 %v1644_v47, %v1643_v34 }
 0x318   : > { %v1661_v14 = vpack.c.bf16 %v1642_v61, %v1641_v18 }
 0x31a   : > { %2310 = vmatprep.mubr.bf16.mxu0 %v1661_v14 }
 0x31b   : > { %2311 = vmatmul.mubr.bf16.gmra.mxu0 %v1662_v40 }
 0x32c   : > { %v2268_v39 = vpop.f32.mrf.mxu1 }
 0x32d   : > { %v1611_v46 = vadd.f32 %v2268_v39, %v3111_v37 }
 0x32e   : > { %v1602_v3 = vpop.f32.mrf.mxu1 }
 0x32f   : > { %v1603_v1 = vadd.f32 %v3111_v37, %v1602_v3  ;;  %v1647_v2 = vmax.f32 %v1611_v46, 0.0 }
 0x330   : > { %v2269_v13 = vpop.f32.mrf.mxu1 }
 0x331   : > { %v1614_v45 = vadd.f32 %v2269_v13, %v3111_v37  ;;  %v1645_v59 = vmax.f32 %v1603_v1, 0.0 }
 0x332   : > { %v1605_v15 = vpop.f32.mrf.mxu1 }
 0x333   : > { %v1606_v17 = vadd.f32 %v3111_v37, %v1605_v15  ;;  %v1648_v53 = vmax.f32 %v1614_v45, 0.0 }
 0x335   : > { %v1646_v50 = vmax.f32 %v1606_v17, 0.0  ;;  %v1664_v52 = vpack.c.bf16 %v1648_v53, %v1647_v2 }
 0x337   : > { %v1663_v41 = vpack.c.bf16 %v1646_v50, %v1645_v59 }
 0x339   : > { %2314 = vmatprep.mubr.bf16.mxu0 %v1663_v41 }
 0x33a   : > { %2315 = vmatmul.mubr.bf16.gmra.mxu0 %v1664_v52 }
 0x342   : > { %v2288_v20 = vpop.f32.mrf.mxu0 }
 0x343   : > { %v1779_v8 = vadd.f32 %v2288_v20, %v3148_v55 }
 0x344   : > { %v1770_v0 = vpop.f32.mrf.mxu0 }
 0x345   : > { %v1771_v51 = vadd.f32 %v3148_v55, %v1770_v0  ;;  %v1899_v4 = vmax.f32 %v1779_v8, 0.0 }
 0x346   : > { %v2289_v21 = vpop.f32.mrf.mxu0 }
 0x347   : > { %v1782_v7 = vadd.f32 %v2289_v21, %v3148_v55  ;;  %v1897_v18 = vmax.f32 %v1771_v51, 0.0 }
 0x348   : > { %v1773_v12 = vpop.f32.mrf.mxu0 }
 0x349   : > { %v1774_v49 = vadd.f32 %v3148_v55, %v1773_v12  ;;  %v1900_v40 = vmax.f32 %v1782_v7, 0.0 }
 0x34a   : > { %v2292_v54 = vpop.f32.mrf.mxu0 }
 0x34b   : > { %v1795_v6 = vadd.f32 %v2292_v54, %v3148_v55  ;;  %v1898_v39 = vmax.f32 %v1774_v49, 0.0 }
 0x34c   : > { %v1786_v22 = vpop.f32.mrf.mxu0 }
 0x34d   : > { %v1787_v42 = vadd.f32 %v3148_v55, %v1786_v22  ;;  %v1903_v57 = vmax.f32 %v1795_v6, 0.0 }
 0x34e   : > { %v2293_v27 = vpop.f32.mrf.mxu0 }
 0x34f   : > { %v1798_v35 = vadd.f32 %v2293_v27, %v3148_v55  ;;  %v1901_v43 = vmax.f32 %v1787_v42, 0.0  ;;  %v1932_v3 = vmax.f32 %v1899_v4, %v1903_v57 }
 0x350   : > { %v1789_v24 = vpop.f32.mrf.mxu0 }
 0x351   : > { %v1790_v28 = vadd.f32 %v3148_v55, %v1789_v24  ;;  %v1904_v63 = vmax.f32 %v1798_v35, 0.0  ;;  %v1930_v17 = vmax.f32 %v1897_v18, %v1901_v43 }
 0x353   : > { %v1902_v5 = vmax.f32 %v1790_v28, 0.0  ;;  %v1933_v53 = vmax.f32 %v1900_v40, %v1904_v63 }
 0x355   : > { %v1931_v59 = vmax.f32 %v1898_v39, %v1902_v5 }
 0x357   : > { %v2296_v25 = vpop.f32.mrf.mxu0 }
 0x358   : > { %v1811_v44 = vadd.f32 %v2296_v25, %v3148_v55 }
 0x359   : > { %v1802_v26 = vpop.f32.mrf.mxu0 }
 0x35a   : > { %v1803_v62 = vadd.f32 %v3148_v55, %v1802_v26  ;;  %v1907_v38 = vmax.f32 %v1811_v44, 0.0 }
 0x35b   : > { %v2297_v58 = vpop.f32.mrf.mxu0 }
 0x35c   : > { %v1814_v9 = vadd.f32 %v2297_v58, %v3148_v55  ;;  %v1905_v13 = vmax.f32 %v1803_v62, 0.0  ;;  %v1936_v50 = vmax.f32 %v1932_v3, %v1907_v38 }
 0x35d   : > { %v1805_v37 = vpop.f32.mrf.mxu0 }
 0x35e   : > { %v1806_v60 = vadd.f32 %v3148_v55, %v1805_v37  ;;  %v1908_v1 = vmax.f32 %v1814_v9, 0.0  ;;  %v1934_v21 = vmax.f32 %v1930_v17, %v1905_v13 }
 0x360   : > { %v1906_v45 = vmax.f32 %v1806_v60, 0.0  ;;  %v1937_v27 = vmax.f32 %v1933_v53, %v1908_v1 }
 0x362   : > { %v1935_v24 = vmax.f32 %v1931_v59, %v1906_v45 }
 0x376   : > { %v2300_v29 = vpop.f32.mrf.mxu0 }
 0x377   : > { %v1827_v61 = vadd.f32 %v2300_v29, %v3148_v55 }
 0x378   : > { %v1818_v31 = vpop.f32.mrf.mxu0 }
 0x379   : > { %v1819_v34 = vadd.f32 %v3148_v55, %v1818_v31  ;;  %v1911_v41 = vmax.f32 %v1827_v61, 0.0 }
 0x37a   : > { %v2301_v32 = vpop.f32.mrf.mxu0 }
 0x37b   : > { %v1830_v14 = vadd.f32 %v2301_v32, %v3148_v55  ;;  %v1909_v52 = vmax.f32 %v1819_v34, 0.0 }
 0x37c   : > { %v1821_v10 = vpop.f32.mrf.mxu0 }
 0x37d   : > { %v1822_v46 = vadd.f32 %v3148_v55, %v1821_v10  ;;  %v1912_v20 = vmax.f32 %v1830_v14, 0.0  ;;  %v1940_v10 = vmax.f32 %v1936_v50, %v1911_v41 }
 0x37f   : > { %v1910_v25 = vmax.f32 %v1822_v46, 0.0 }
 0x381   : > { %v1939_v35 = vmax.f32 %v1935_v24, %v1910_v25 }
 0x399   : > { %v2304_v19 = vpop.f32.mrf.mxu0 }
 0x39a   : > { %v1843_v0 = vadd.f32 %v2304_v19, %v3148_v55  ;;  %v1938_v19 = vmax.f32 %v1934_v21, %v1909_v52 }
 0x39b   : > { %v1834_v30 = vpop.f32.mrf.mxu0 }
 0x39c   : > { %v1835_v12 = vadd.f32 %v3148_v55, %v1834_v30  ;;  %v1941_v30 = vmax.f32 %v1937_v27, %v1912_v20 }
 0x39d   : > { %v2305_v56 = vpop.f32.mrf.mxu0 }
 0x39e   : > { %v1846_v15 = vadd.f32 %v2305_v56, %v3148_v55  ;;  %v1915_v56 = vmax.f32 %v1843_v0, 0.0 }
 0x39f   : > { %v1837_v16 = vpop.f32.mrf.mxu0 }
 0x3a0   : > { %v1838_v54 = vadd.f32 %v3148_v55, %v1837_v16  ;;  %v1916_v26 = vmax.f32 %v1846_v15, 0.0  ;;  %v1913_v16 = vmax.f32 %v1835_v12, 0.0  ;;  %v1944_v57 = vmax.f32 %v1940_v10, %v1915_v56 }
 0x3a2   : > { %v1914_v6 = vmax.f32 %v1838_v54, 0.0  ;;  %v1945_v28 = vmax.f32 %v1941_v30, %v1916_v26  ;;  %v1942_v9 = vmax.f32 %v1938_v19, %v1913_v16 }
 0x3a4   : > { %v1943_v60 = vmax.f32 %v1939_v35, %v1914_v6 }
 0x3b8   : > { %v2308_v11 = vpop.f32.mrf.mxu0 }
 0x3b9   : > { %v1859_v58 = vadd.f32 %v2308_v11, %v3148_v55 }
 0x3ba   : > { %v1850_v48 = vpop.f32.mrf.mxu0 }
 0x3bb   : > { %v1851_v37 = vadd.f32 %v3148_v55, %v1850_v48 }
 0x3bc   : > { %v2309_v33 = vpop.f32.mrf.mxu0 }
 0x3bd   : > { %v1862_v22 = vadd.f32 %v2309_v33, %v3148_v55  ;;  %v1917_v44 = vmax.f32 %v1851_v37, 0.0 }
 0x3be   : > { %v1853_v23 = vpop.f32.mrf.mxu0 }
 0x3bf   : > { %v1854_v29 = vadd.f32 %v3148_v55, %v1853_v23  ;;  %v1920_v33 = vmax.f32 %v1862_v22, 0.0  ;;  %v1919_v23 = vmax.f32 %v1859_v58, 0.0  ;;  %v1946_v61 = vmax.f32 %v1942_v9, %v1917_v44 }
 0x3c1   : > { %v1918_v51 = vmax.f32 %v1854_v29, 0.0  ;;  %v1948_v18 = vmax.f32 %v1944_v57, %v1919_v23 }
 0x3c3   : > { %v1947_v34 = vmax.f32 %v1943_v60, %v1918_v51 }
 0x3db   : > { %v2312_v36 = vpop.f32.mrf.mxu0 }
 0x3dc   : > { %v1875_v8 = vadd.f32 %v2312_v36, %v3148_v55  ;;  %v1949_v36 = vmax.f32 %v1945_v28, %v1920_v33 }
 0x3dd   : > { %v1866_v47 = vpop.f32.mrf.mxu0 }
 0x3de   : > { %v1867_v11 = vadd.f32 %v3148_v55, %v1866_v47  ;;  %v1923_v43 = vmax.f32 %v1875_v8, 0.0 }
 0x3df   : > { %v2313_v2 = vpop.f32.mrf.mxu0 }
 0x3e0   : > { %v1878_v31 = vadd.f32 %v2313_v2, %v3148_v55  ;;  %v1921_v5 = vmax.f32 %v1867_v11, 0.0  ;;  %v1952_v45 = vmax.f32 %v1948_v18, %v1923_v43 }
 0x3e1   : > { %v1869_v32 = vpop.f32.mrf.mxu0 }
 0x3e2   : > { %v1870_v48 = vadd.f32 %v3148_v55, %v1869_v32  ;;  %v1924_v7 = vmax.f32 %v1878_v31, 0.0  ;;  %v1950_v46 = vmax.f32 %v1946_v61, %v1921_v5 }
 0x3e4   : > { %v1922_v38 = vmax.f32 %v1870_v48, 0.0  ;;  %v1953_v14 = vmax.f32 %v1949_v36, %v1924_v7 }
 0x3e6   : > { %v1951_v15 = vmax.f32 %v1947_v34, %v1922_v38 }
 0x3fa   : > { %v2316_v42 = vpop.f32.mrf.mxu0 }
 0x3fb   : > { %v1891_v62 = vadd.f32 %v2316_v42, %v3148_v55 }
 0x3fc   : > { %v1882_v49 = vpop.f32.mrf.mxu0 }
 0x3fd   : > { %v1883_v4 = vadd.f32 %v3148_v55, %v1882_v49  ;;  %v1927_v39 = vmax.f32 %v1891_v62, 0.0 }
 0x3fe   : > { %v2317_v63 = vpop.f32.mrf.mxu0 }
 0x3ff   : > { %v1894_v47 = vadd.f32 %v2317_v63, %v3148_v55  ;;  %v1925_v3 = vmax.f32 %v1883_v4, 0.0  ;;  %v1956_v59 = vmax.f32 %v1952_v45, %v1927_v39 }
 0x400   : > { %v1885_v40 = vpop.f32.mrf.mxu0 }
 0x401   : > { %v1928_v13 = vmax.f32 %v1894_v47, 0.0  ;;  %v1886_v1 = vadd.f32 %v3148_v55, %v1885_v40  ;;  %v1954_v50 = vmax.f32 %v1950_v46, %v1925_v3 }
 0x403   : > { %v1957_v17 = vmax.f32 %v1953_v14, %v1928_v13  ;;  %v1926_v53 = vmax.f32 %v1886_v1, 0.0 }
 0x405   : > { %v1955_v2 = vmax.f32 %v1951_v15, %v1926_v53  ;;  %v1959_v41 = vmax.f32 %v1956_v59, %v1957_v17 }
 0x407   : > { %v1958_v52 = vmax.f32 %v1954_v50, %v1955_v2 }
 0x409   : > { %v1960_v20 = vmax.f32 %v1958_v52, %v1959_v41 }
 0x40b   : > { %v1967_v0 = vrot.slane %v1960_v20, 4 }
 0x40d   : > { %v1968_v21 = vmax.f32 %v1960_v20, %v1967_v0 }
 0x40f   : > { %v1969_v12 = vrot.slane %v1968_v21, 2 }
 0x411   : > { %v1970_v54 = vmax.f32 %v1968_v21, %v1969_v12 }
 0x413   : > { %v1971_v55 = vrot.slane %v1970_v54, 1 }
 0x415   : > { %v1972_v22 = vmax.f32 %v1970_v54, %v1971_v55 }
 0x417   : > { %1973 = vst [vmem:[%s361_s25] sm:$0x1] %v1972_v22 }
 0x418   : > { %2446 = shalt.err (!%p2443_p5)
}
 0x419   : > { %s2447_s0 = scalar_lea.hbm %s1987_s27, 16  ;;  %s2451_s25 = scalar_lea.hbm %s3230_s9, 32 }
 0x41a   : > { %p2448_p6 = scmp.ne.s32.totalorder %s1987_s27, %s2447_s0  ;;  %p2452_p10 = scmp.lt.s32.totalorder %s1987_s27, %s3230_s9 }
 0x41b   : > { %p2453_p11 = scmp.lt.s32.totalorder %s2451_s25, %s2447_s0 }
 0x41c   : > { %p2449_p7 = pnand %p2448_p6, %p2605_p4 }
 0x41d   : > { %p2454_p12 = por %p2453_p11, %p2452_p10 }
 0x41e   : > { %p2450_p9 = pneg %p2449_p7 }
 0x420   : > { %p2455_p13 = pnand %p2454_p12, %p2450_p9 }
 0x422   : > { %2458 = shalt.err (!%p2455_p13)
}
 0x423   : > { %2326 = dma.vmem_to_hbm [thread:$0]  (%p2605_p4), %s1990_s26, 16, %s1987_s27, %s1975_s15  }
 0x424 PF: > { %p2332_p0 = scmp.ge.s32.totalorder %s2509_s14, 2  ;;  %s2001_s16 = sand.u32 1, %s2489_s30  }
 0x425   : > { %s2002_s18 = scalar_lea.sflag [#allocation4], %s2001_s16 }
 0x426   : > { %p2329_p1 = pnand %p2332_p0, %p2612_p8 }
 0x428   : > { %p2330_p2 = pneg %p2329_p1 }
 0x42a   : > { %2484 = dma.done.wait (%p2330_p2), %s2002_s18, 16  }
 0x42b   : > { %2486 = vsyncadd (%p2330_p2), %s2002_s18, 4294967280  ;;  %s22_s14 = sadd.s32 1, %s2509_s14   ;;  %s3235_s30 = smov %s2493_s10 }
 0x42c   : > { %p19_p3 = scmp.ge.s32.totalorder %s22_s14, 4   ;;  %s3236_s10 = smov %s2497_s11 }
 0x42d   : > { %s3237_s11 = smov %s2618_s22  ;;  %s3238_s12 = smov %s2505_s13 }
 0x42e   : > { %s3239_s13 = smov %s3241_s17  ;;  %21 = sbr.rel (!%p19_p3) target bundleno = 6 (0x6), region = 99 }
 0x433   :  { %2006 = vsyncpa [#allocation4], 1 }
 0x434   :  { %2008 = vsyncpa [#allocation4 + $0x1], 1 }

</bundles_post_ra>
